<compile_context>
chip_gen: v7x
topology: tpu7x:2x2x1
jax: 0.10.0
libtpu: 0.0.40
codegen_flags: <defaults>
</compile_context>

<pallas_src>
import functools

import jax
import jax.numpy as jnp
from jax import lax
from jax.experimental import pallas as pl
from jax.experimental.pallas import tpu as pltpu

VMEM_SPEC = pl.BlockSpec(memory_space=pltpu.MemorySpace.VMEM)


# ----------------------------------------------------------------------------
# Weight slab packing (init-time only)
# ----------------------------------------------------------------------------
class _SlabPacker:
    """Packs 2-D f32 pieces into one [rows, >=128] slab; rows 8-aligned."""

    def __init__(self):
        self._pieces = []

    def add(self, name, arr):
        arr = jnp.asarray(arr, jnp.float32)
        assert arr.ndim == 2
        self._pieces.append((name, arr))

    def finalize(self):
        ncols = max(128, max((-(-a.shape[1] // 128)) * 128
                             for _, a in self._pieces))
        offsets, rows, row = {}, [], 0
        for name, a in self._pieces:
            r, c = a.shape
            r_pad = (-(-r // 8)) * 8                  # sublane (8) aligned bands
            offsets[name] = (row, r, c)               # static python ints
            rows.append(jnp.zeros((r_pad, ncols), jnp.float32).at[:r, :c].set(a))
            row += r_pad
        return jnp.concatenate(rows, axis=0), offsets


# ----------------------------------------------------------------------------
# In-kernel helpers (traced inside the fused kernel; everything stays in VMEM)
# ----------------------------------------------------------------------------
def _gat_relation(h_src, h_dst, adj, w_src, wl_t, wr_t, n_heads, fph):
    """One GATConv relation, softmax batched over heads.

    Returns sum over heads of (alpha_h @ feat_src_h), shape [Nd, fph].
    Bias + 1/H head-mean are applied by the caller.
    """
    # feat_src for all heads: one plain [Ns,hd]@[hd,H*F] matmul.
    feat_src = jnp.dot(h_src, w_src, preferred_element_type=jnp.float32)

    # attn_l / attn_r folded into the weights at init -> el/er are tiny dots.
    el_t = lax.dot_general(wl_t, h_src, (((1,), (1,)), ((), ())),
                           preferred_element_type=jnp.float32)      # [H, Ns]
    er_t = lax.dot_general(wr_t, h_dst, (((1,), (1,)), ((), ())),
                           preferred_element_type=jnp.float32)      # [H, Nd]

    # Batched-over-heads edge softmax: [H, Nd, Ns].
    e = el_t[:, None, :] + er_t[:, :, None]
    e = jnp.where(e > 0, e, 0.2 * e)                  # leaky_relu(0.2)
    adj3 = adj[None, :, :]
    e = jnp.where(adj3 > 0, e, -1e30)                 # mask non-edges
    m = jnp.max(e, axis=-1, keepdims=True)            # per-dst, per-head max
    p = jnp.exp(e - m) * adj3
    s = jnp.sum(p, axis=-1, keepdims=True)
    # zero-in-degree rows: p == 0 everywhere -> alpha == 0; guard denominator.
    alpha = p / jnp.where(s > 0.0, s, 1.0)            # exact divide (parity)

    # Per-head messages, summed over heads (static unroll, H small).
    acc = jnp.zeros((h_dst.shape[0], fph), jnp.float32)
    for h in range(n_heads):
        acc = acc + jnp.dot(alpha[h], feat_src[:, h * fph:(h + 1) * fph],
                            preferred_element_type=jnp.float32)
    return acc


# ----------------------------------------------------------------------------
# Fused forward kernel
# ----------------------------------------------------------------------------
def _fused_forward_kernel(offs, relations, n_heads, fph,
                          wslab_ref, usv_ref, task_ref, adj_tt_ref, adj_ut_ref,
                          o_ref):
    def W(name):                                       # static slab slice
        r0, r, c = offs[name]
        return wslab_ref[r0:r0 + r, 0:c]

    inv_h = 1.0 / n_heads

    # Encoders (weights pre-transposed to [in, out]).
    usv_h = jnp.dot(usv_ref[...], W('usv_enc_w'),
                    preferred_element_type=jnp.float32) + W('usv_enc_b')
    task_h = jnp.dot(task_ref[...], W('task_enc_w'),
                     preferred_element_type=jnp.float32) + W('task_enc_b')

    adj_tt = adj_tt_ref[...]
    adj_ut = adj_ut_ref[...]

    # Hetero GAT layers.  Layer 0 sees {'usv','task'}; afterwards only 'task'
    # remains (both relations target 'task'), so layers >= 1 run tt only.
    h_task = task_h
    for l, rels in enumerate(relations):
        acc = jnp.zeros((h_task.shape[0], fph), jnp.float32)
        for r in rels:
            h_src = h_task if r == 'tt' else usv_h
            adj = adj_tt if r == 'tt' else adj_ut
            acc = acc + _gat_relation(
                h_src, h_task, adj,
                W(f'l{l}_{r}_w_src'), W(f'l{l}_{r}_wl_t'), W(f'l{l}_{r}_wr_t'),
                n_heads, fph)
        # mean over heads + (per-relation biases, head-meaned+summed at init)
        h_merged = acc * inv_h + W(f'l{l}_bias_mean')                  # [Nt,F]
        h_task = jnp.dot(h_merged, W(f'l{l}_post_w'),
                         preferred_element_type=jnp.float32) + W(f'l{l}_post_b')

    # task_decoder (Linear + ReLU); usv_decoder is dead code in the reference
    # forward ('usv' never survives a GAT layer), so usv_emb is the encoder out.
    task_emb = jnp.maximum(
        jnp.dot(h_task, W('task_dec_w'), preferred_element_type=jnp.float32)
        + W('task_dec_b'), 0.0)
    usv_emb = usv_h

    # Global pool: per-type node mean, concat expressed as split matmul.
    gu = jnp.mean(usv_emb, axis=0, keepdims=True)                      # [1,hd]
    gt = jnp.mean(task_emb, axis=0, keepdims=True)                     # [1,hd]
    out = (jnp.dot(gu, W('pool_wu'), preferred_element_type=jnp.float32)
           + jnp.dot(gt, W('pool_wt'), preferred_element_type=jnp.float32)
           + W('pool_b'))
    o_ref[...] = out


# ----------------------------------------------------------------------------
# Parameters: build the packed slab (pre-transposed, attn-folded) once.
# ----------------------------------------------------------------------------
def init_params(key, usv_feat_dim, task_feat_dim, hidden_dim, n_heads,
                num_layers=2):
    # mirrors the PyTorch fallback for feat_per_head
    fph = hidden_dim // n_heads if hidden_dim % n_heads == 0 else hidden_dim
    hd, H = hidden_dim, n_heads
    keys = iter(jax.random.split(key, 512))

    def w(shape, scale=0.1):
        return (scale * jax.random.normal(next(keys), shape)).astype(jnp.float32)

    packer = _SlabPacker()
    packer.add('usv_enc_w', w((usv_feat_dim, hd)))   # pre-transposed [in,out]
    packer.add('usv_enc_b', w((1, hd)))
    packer.add('task_enc_w', w((task_feat_dim, hd)))
    packer.add('task_enc_b', w((1, hd)))

    relations = []
    for l in range(num_layers):
        # usv->task only contributes at layer 0; its GATConv params for later
        # layers are dead code in the reference forward and not stored.
        rels = ('tt', 'ut') if l == 0 else ('tt',)
        bias_mean = jnp.zeros((1, fph), jnp.float32)
        for r in rels:
            w_src = w((hd, H * fph))                 # fc_src^T
            w_dst = w((hd, H * fph))                 # fc_dst^T (used via fold)
            attn_l = w((H, fph))
            attn_r = w((H, fph))
            bias = w((H, fph))
            # Fold attention vectors into the projections:
            #   el = h_src @ wl,  wl[d,h] = sum_f w_src[d,h*F+f]*attn_l[h,f]
            wl_t = jnp.einsum('dhf,hf->hd', w_src.reshape(hd, H, fph), attn_l)
            wr_t = jnp.einsum('dhf,hf->hd', w_dst.reshape(hd, H, fph), attn_r)
            packer.add(f'l{l}_{r}_w_src', w_src)
            packer.add(f'l{l}_{r}_wl_t', wl_t)
            packer.add(f'l{l}_{r}_wr_t', wr_t)
            # GATConv bias is added before the module's mean-over-heads and
            # HeteroGraphConv aggregate='sum' -> head-mean then sum over rels.
            bias_mean = bias_mean + jnp.mean(bias, axis=0, keepdims=True)
        packer.add(f'l{l}_bias_mean', bias_mean)
        packer.add(f'l{l}_post_w', w((fph, hd)))     # pre-transposed
        packer.add(f'l{l}_post_b', w((1, hd)))
        relations.append(rels)

    packer.add('task_dec_w', w((hd, hd)))
    packer.add('task_dec_b', w((1, hd)))
    # usv_decoder exists in the module but is never executed by forward().
    pool_w = w((2 * hd, hd))                         # pre-transposed [2hd,hd]
    packer.add('pool_wu', pool_w[:hd])
    packer.add('pool_wt', pool_w[hd:])
    packer.add('pool_b', w((1, hd)))

    wslab, offsets = packer.finalize()
    static = {'hidden_dim': hd, 'n_heads': H, 'feat_per_head': fph,
              'offsets': offsets, 'relations': tuple(relations)}
    return wslab, static


# ----------------------------------------------------------------------------
# Forward: one pallas_call, 5 input DMAs for the whole model
# ----------------------------------------------------------------------------
def usv_hetero_gnn_forward(wslab, static, usv_feat, task_feat, adj_tt, adj_ut):
    kernel = functools.partial(_fused_forward_kernel,
                               static['offsets'], static['relations'],
                               static['n_heads'], static['feat_per_head'])
    out = pl.pallas_call(
        kernel,
        out_shape=jax.ShapeDtypeStruct((1, static['hidden_dim']), jnp.float32),
        in_specs=[VMEM_SPEC] * 5,
        out_specs=VMEM_SPEC,
    )(wslab, usv_feat, task_feat, adj_tt, adj_ut)
    return out[0]                                    # squeeze(0) -> [hidden]


if __name__ == "__main__":
    key = jax.random.PRNGKey(0)
    k_param, k_usv, k_task, k_tt, k_ut = jax.random.split(key, 5)

    N_usv, N_task = 8, 16
    usv_feat_dim, task_feat_dim, hidden_dim, n_heads = 8, 16, 32, 4

    wslab, static = init_params(k_param, usv_feat_dim, task_feat_dim,
                                hidden_dim, n_heads, num_layers=2)

    usv_feat = jax.random.normal(k_usv, (N_usv, usv_feat_dim), jnp.float32)
    task_feat = jax.random.normal(k_task, (N_task, task_feat_dim), jnp.float32)
    adj_tt = jax.random.bernoulli(k_tt, 0.3, (N_task, N_task)).astype(jnp.float32)
    adj_ut = jax.random.bernoulli(k_ut, 0.4, (N_task, N_usv)).astype(jnp.float32)

    out = usv_hetero_gnn_forward(wslab, static, usv_feat, task_feat,
                                 adj_tt, adj_ut)
    out = jax.block_until_ready(out)
    assert out.shape == (hidden_dim,) and out.dtype == jnp.float32
    print("KERNEL_OK")
</pallas_src>

<mosaic_0001>
module attributes {stable_mosaic.version = 11 : i64} {
  func.func @_fused_forward_kernel(%arg0: memref<344x128xf32, #tpu.memory_space<vmem>>, %arg1: memref<8x8xf32, #tpu.memory_space<vmem>>, %arg2: memref<16x16xf32, #tpu.memory_space<vmem>>, %arg3: memref<16x16xf32, #tpu.memory_space<vmem>>, %arg4: memref<16x8xf32, #tpu.memory_space<vmem>>, %arg5: memref<1x32xf32, #tpu.memory_space<vmem>>) attributes {dimension_semantics = [], scalar_prefetch = 0 : i64, scratch_operands = 0 : i64, tpu.core_type = #tpu.core_type<tc>} {
    %c0 = arith.constant 0 : index
    %c0_0 = arith.constant 0 : index
    %0 = vector.load %arg1[%c0, %c0_0] : memref<8x8xf32, #tpu.memory_space<vmem>>, vector<8x8xf32>
    %c0_1 = arith.constant 0 : index
    %c0_2 = arith.constant 0 : index
    %1 = vector.load %arg0[%c0_1, %c0_2] : memref<344x128xf32, #tpu.memory_space<vmem>>, vector<8x32xf32>
    %cst = arith.constant dense<0.000000e+00> : vector<8x32xf32>
    %2 = tpu.matmul %0, %1, %cst {dimension_numbers = #tpu.dot_dimension_numbers<[1], [0], [0], [1], [0, 0, 1, 1], [], []>} : vector<8x8xf32>, vector<8x32xf32>, vector<8x32xf32> -> vector<8x32xf32>
    %c8 = arith.constant 8 : index
    %c0_3 = arith.constant 0 : index
    %3 = vector.load %arg0[%c8, %c0_3] : memref<344x128xf32, #tpu.memory_space<vmem>>, vector<1x32xf32>
    %4 = vector.broadcast %3 : vector<1x32xf32> to vector<8x32xf32>
    %5 = arith.addf %2, %4 : vector<8x32xf32>
    %c0_4 = arith.constant 0 : index
    %c0_5 = arith.constant 0 : index
    %6 = vector.load %arg2[%c0_4, %c0_5] : memref<16x16xf32, #tpu.memory_space<vmem>>, vector<16x16xf32>
    %c16 = arith.constant 16 : index
    %c0_6 = arith.constant 0 : index
    %7 = vector.load %arg0[%c16, %c0_6] : memref<344x128xf32, #tpu.memory_space<vmem>>, vector<16x32xf32>
    %cst_7 = arith.constant dense<0.000000e+00> : vector<16x32xf32>
    %8 = tpu.matmul %6, %7, %cst_7 {dimension_numbers = #tpu.dot_dimension_numbers<[1], [0], [0], [1], [0, 0, 1, 1], [], []>} : vector<16x16xf32>, vector<16x32xf32>, vector<16x32xf32> -> vector<16x32xf32>
    %c32 = arith.constant 32 : index
    %c0_8 = arith.constant 0 : index
    %9 = vector.load %arg0[%c32, %c0_8] : memref<344x128xf32, #tpu.memory_space<vmem>>, vector<1x32xf32>
    %10 = vector.broadcast %9 : vector<1x32xf32> to vector<16x32xf32>
    %11 = arith.addf %8, %10 : vector<16x32xf32>
    %c0_9 = arith.constant 0 : index
    %c0_10 = arith.constant 0 : index
    %12 = vector.load %arg3[%c0_9, %c0_10] : memref<16x16xf32, #tpu.memory_space<vmem>>, vector<16x16xf32>
    %c0_11 = arith.constant 0 : index
    %c0_12 = arith.constant 0 : index
    %13 = vector.load %arg4[%c0_11, %c0_12] : memref<16x8xf32, #tpu.memory_space<vmem>>, vector<16x8xf32>
    %cst_13 = arith.constant 0.000000e+00 : f32
    %14 = vector.broadcast %cst_13 : f32 to vector<16x8xf32>
    %c40 = arith.constant 40 : index
    %c0_14 = arith.constant 0 : index
    %15 = vector.load %arg0[%c40, %c0_14] : memref<344x128xf32, #tpu.memory_space<vmem>>, vector<32x32xf32>
    %c72 = arith.constant 72 : index
    %c0_15 = arith.constant 0 : index
    %16 = vector.load %arg0[%c72, %c0_15] : memref<344x128xf32, #tpu.memory_space<vmem>>, vector<4x32xf32>
    %c80 = arith.constant 80 : index
    %c0_16 = arith.constant 0 : index
    %17 = vector.load %arg0[%c80, %c0_16] : memref<344x128xf32, #tpu.memory_space<vmem>>, vector<4x32xf32>
    %cst_17 = arith.constant dense<0.000000e+00> : vector<16x32xf32>
    %18 = tpu.matmul %11, %15, %cst_17 {dimension_numbers = #tpu.dot_dimension_numbers<[1], [0], [0], [1], [0, 0, 1, 1], [], []>} : vector<16x32xf32>, vector<32x32xf32>, vector<16x32xf32> -> vector<16x32xf32>
    %cst_18 = arith.constant dense<0.000000e+00> : vector<4x16xf32>
    %19 = tpu.matmul %16, %11, %cst_18 {dimension_numbers = #tpu.dot_dimension_numbers<[1], [1], [0], [0], [0, 0, 1, 0], [], []>} : vector<4x32xf32>, vector<16x32xf32>, vector<4x16xf32> -> vector<4x16xf32>
    %cst_19 = arith.constant dense<0.000000e+00> : vector<4x16xf32>
    %20 = tpu.matmul %17, %11, %cst_19 {dimension_numbers = #tpu.dot_dimension_numbers<[1], [1], [0], [0], [0, 0, 1, 0], [], []>} : vector<4x32xf32>, vector<16x32xf32>, vector<4x16xf32> -> vector<4x16xf32>
    %21 = vector.shape_cast %19 : vector<4x16xf32> to vector<4x1x16xf32>
    %22 = vector.shape_cast %20 : vector<4x16xf32> to vector<4x16x1xf32>
    %23 = vector.broadcast %21 : vector<4x1x16xf32> to vector<4x16x16xf32>
    %24 = vector.broadcast %22 : vector<4x16x1xf32> to vector<4x16x16xf32>
    %25 = arith.addf %23, %24 : vector<4x16x16xf32>
    %cst_20 = arith.constant 0.000000e+00 : f32
    %26 = vector.broadcast %cst_20 : f32 to vector<4x16x16xf32>
    %27 = arith.cmpf ogt, %25, %26 : vector<4x16x16xf32>
    %cst_21 = arith.constant 2.000000e-01 : f32
    %28 = vector.broadcast %cst_21 : f32 to vector<4x16x16xf32>
    %29 = arith.mulf %28, %25 : vector<4x16x16xf32>
    %30 = arith.select %27, %25, %29 : vector<4x16x16xi1>, vector<4x16x16xf32>
    %31 = vector.shape_cast %12 : vector<16x16xf32> to vector<1x16x16xf32>
    %cst_22 = arith.constant 0.000000e+00 : f32
    %32 = vector.broadcast %cst_22 : f32 to vector<1x16x16xf32>
    %33 = arith.cmpf ogt, %31, %32 : vector<1x16x16xf32>
    %cst_23 = arith.constant -1.000000e+30 : f32
    %34 = vector.shape_cast %33 : vector<1x16x16xi1> to vector<1x16x16xi1>
    %35 = vector.broadcast %34 : vector<1x16x16xi1> to vector<4x16x16xi1>
    %36 = vector.broadcast %cst_23 : f32 to vector<4x16x16xf32>
    %37 = arith.select %35, %30, %36 : vector<4x16x16xi1>, vector<4x16x16xf32>
    %cst_24 = arith.constant dense<0xFF800000> : vector<4x16xf32>
    %38 = vector.multi_reduction <maximumf>, %37, %cst_24 [2] : vector<4x16x16xf32> to vector<4x16xf32>
    %39 = vector.shape_cast %38 : vector<4x16xf32> to vector<4x16x1xf32>
    %40 = vector.broadcast %39 : vector<4x16x1xf32> to vector<4x16x16xf32>
    %41 = arith.subf %37, %40 : vector<4x16x16xf32>
    %42 = math.exp %41 : vector<4x16x16xf32>
    %43 = vector.broadcast %31 : vector<1x16x16xf32> to vector<4x16x16xf32>
    %44 = arith.mulf %42, %43 : vector<4x16x16xf32>
    %cst_25 = arith.constant dense<0.000000e+00> : vector<4x16xf32>
    %45 = vector.multi_reduction <add>, %44, %cst_25 [2] : vector<4x16x16xf32> to vector<4x16xf32>
    %46 = vector.shape_cast %45 : vector<4x16xf32> to vector<4x16x1xf32>
    %cst_26 = arith.constant 0.000000e+00 : f32
    %47 = vector.broadcast %cst_26 : f32 to vector<4x16x1xf32>
    %48 = arith.cmpf ogt, %46, %47 : vector<4x16x1xf32>
    %cst_27 = arith.constant 1.000000e+00 : f32
    %49 = vector.broadcast %cst_27 : f32 to vector<4x16x1xf32>
    %50 = arith.select %48, %46, %49 : vector<4x16x1xi1>, vector<4x16x1xf32>
    %51 = vector.broadcast %50 : vector<4x16x1xf32> to vector<4x16x16xf32>
    %52 = arith.divf %44, %51 : vector<4x16x16xf32>
    %cst_28 = arith.constant 0.000000e+00 : f32
    %53 = vector.broadcast %cst_28 : f32 to vector<16x8xf32>
    %54 = vector.extract_strided_slice %52 {offsets = [0, 0, 0], sizes = [1, 16, 16], strides = [1, 1, 1]} : vector<4x16x16xf32> to vector<1x16x16xf32>
    %55 = vector.shape_cast %54 : vector<1x16x16xf32> to vector<16x16xf32>
    %56 = vector.extract_strided_slice %18 {offsets = [0, 0], sizes = [16, 8], strides = [1, 1]} : vector<16x32xf32> to vector<16x8xf32>
    %cst_29 = arith.constant dense<0.000000e+00> : vector<16x8xf32>
    %57 = tpu.matmul %55, %56, %cst_29 {dimension_numbers = #tpu.dot_dimension_numbers<[1], [0], [0], [1], [0, 0, 1, 1], [], []>} : vector<16x16xf32>, vector<16x8xf32>, vector<16x8xf32> -> vector<16x8xf32>
    %58 = arith.addf %53, %57 : vector<16x8xf32>
    %59 = vector.extract_strided_slice %52 {offsets = [1, 0, 0], sizes = [1, 16, 16], strides = [1, 1, 1]} : vector<4x16x16xf32> to vector<1x16x16xf32>
    %60 = vector.shape_cast %59 : vector<1x16x16xf32> to vector<16x16xf32>
    %61 = vector.extract_strided_slice %18 {offsets = [0, 8], sizes = [16, 8], strides = [1, 1]} : vector<16x32xf32> to vector<16x8xf32>
    %cst_30 = arith.constant dense<0.000000e+00> : vector<16x8xf32>
    %62 = tpu.matmul %60, %61, %cst_30 {dimension_numbers = #tpu.dot_dimension_numbers<[1], [0], [0], [1], [0, 0, 1, 1], [], []>} : vector<16x16xf32>, vector<16x8xf32>, vector<16x8xf32> -> vector<16x8xf32>
    %63 = arith.addf %58, %62 : vector<16x8xf32>
    %64 = vector.extract_strided_slice %52 {offsets = [2, 0, 0], sizes = [1, 16, 16], strides = [1, 1, 1]} : vector<4x16x16xf32> to vector<1x16x16xf32>
    %65 = vector.shape_cast %64 : vector<1x16x16xf32> to vector<16x16xf32>
    %66 = vector.extract_strided_slice %18 {offsets = [0, 16], sizes = [16, 8], strides = [1, 1]} : vector<16x32xf32> to vector<16x8xf32>
    %cst_31 = arith.constant dense<0.000000e+00> : vector<16x8xf32>
    %67 = tpu.matmul %65, %66, %cst_31 {dimension_numbers = #tpu.dot_dimension_numbers<[1], [0], [0], [1], [0, 0, 1, 1], [], []>} : vector<16x16xf32>, vector<16x8xf32>, vector<16x8xf32> -> vector<16x8xf32>
    %68 = arith.addf %63, %67 : vector<16x8xf32>
    %69 = vector.extract_strided_slice %52 {offsets = [3, 0, 0], sizes = [1, 16, 16], strides = [1, 1, 1]} : vector<4x16x16xf32> to vector<1x16x16xf32>
    %70 = vector.shape_cast %69 : vector<1x16x16xf32> to vector<16x16xf32>
    %71 = vector.extract_strided_slice %18 {offsets = [0, 24], sizes = [16, 8], strides = [1, 1]} : vector<16x32xf32> to vector<16x8xf32>
    %cst_32 = arith.constant dense<0.000000e+00> : vector<16x8xf32>
    %72 = tpu.matmul %70, %71, %cst_32 {dimension_numbers = #tpu.dot_dimension_numbers<[1], [0], [0], [1], [0, 0, 1, 1], [], []>} : vector<16x16xf32>, vector<16x8xf32>, vector<16x8xf32> -> vector<16x8xf32>
    %73 = arith.addf %68, %72 : vector<16x8xf32>
    %74 = arith.addf %14, %73 : vector<16x8xf32>
    %c88 = arith.constant 88 : index
    %c0_33 = arith.constant 0 : index
    %75 = vector.load %arg0[%c88, %c0_33] : memref<344x128xf32, #tpu.memory_space<vmem>>, vector<32x32xf32>
    %c120 = arith.constant 120 : index
    %c0_34 = arith.constant 0 : index
    %76 = vector.load %arg0[%c120, %c0_34] : memref<344x128xf32, #tpu.memory_space<vmem>>, vector<4x32xf32>
    %c128 = arith.constant 128 : index
    %c0_35 = arith.constant 0 : index
    %77 = vector.load %arg0[%c128, %c0_35] : memref<344x128xf32, #tpu.memory_space<vmem>>, vector<4x32xf32>
    %cst_36 = arith.constant dense<0.000000e+00> : vector<8x32xf32>
    %78 = tpu.matmul %5, %75, %cst_36 {dimension_numbers = #tpu.dot_dimension_numbers<[1], [0], [0], [1], [0, 0, 1, 1], [], []>} : vector<8x32xf32>, vector<32x32xf32>, vector<8x32xf32> -> vector<8x32xf32>
    %cst_37 = arith.constant dense<0.000000e+00> : vector<4x8xf32>
    %79 = tpu.matmul %76, %5, %cst_37 {dimension_numbers = #tpu.dot_dimension_numbers<[1], [1], [0], [0], [0, 0, 1, 0], [], []>} : vector<4x32xf32>, vector<8x32xf32>, vector<4x8xf32> -> vector<4x8xf32>
    %cst_38 = arith.constant dense<0.000000e+00> : vector<4x16xf32>
    %80 = tpu.matmul %77, %11, %cst_38 {dimension_numbers = #tpu.dot_dimension_numbers<[1], [1], [0], [0], [0, 0, 1, 0], [], []>} : vector<4x32xf32>, vector<16x32xf32>, vector<4x16xf32> -> vector<4x16xf32>
    %81 = vector.shape_cast %79 : vector<4x8xf32> to vector<4x1x8xf32>
    %82 = vector.shape_cast %80 : vector<4x16xf32> to vector<4x16x1xf32>
    %83 = vector.broadcast %81 : vector<4x1x8xf32> to vector<4x16x8xf32>
    %84 = vector.broadcast %82 : vector<4x16x1xf32> to vector<4x16x8xf32>
    %85 = arith.addf %83, %84 : vector<4x16x8xf32>
    %cst_39 = arith.constant 0.000000e+00 : f32
    %86 = vector.broadcast %cst_39 : f32 to vector<4x16x8xf32>
    %87 = arith.cmpf ogt, %85, %86 : vector<4x16x8xf32>
    %cst_40 = arith.constant 2.000000e-01 : f32
    %88 = vector.broadcast %cst_40 : f32 to vector<4x16x8xf32>
    %89 = arith.mulf %88, %85 : vector<4x16x8xf32>
    %90 = arith.select %87, %85, %89 : vector<4x16x8xi1>, vector<4x16x8xf32>
    %91 = vector.shape_cast %13 : vector<16x8xf32> to vector<1x16x8xf32>
    %cst_41 = arith.constant 0.000000e+00 : f32
    %92 = vector.broadcast %cst_41 : f32 to vector<1x16x8xf32>
    %93 = arith.cmpf ogt, %91, %92 : vector<1x16x8xf32>
    %cst_42 = arith.constant -1.000000e+30 : f32
    %94 = vector.shape_cast %93 : vector<1x16x8xi1> to vector<1x16x8xi1>
    %95 = vector.broadcast %94 : vector<1x16x8xi1> to vector<4x16x8xi1>
    %96 = vector.broadcast %cst_42 : f32 to vector<4x16x8xf32>
    %97 = arith.select %95, %90, %96 : vector<4x16x8xi1>, vector<4x16x8xf32>
    %cst_43 = arith.constant dense<0xFF800000> : vector<4x16xf32>
    %98 = vector.multi_reduction <maximumf>, %97, %cst_43 [2] : vector<4x16x8xf32> to vector<4x16xf32>
    %99 = vector.shape_cast %98 : vector<4x16xf32> to vector<4x16x1xf32>
    %100 = vector.broadcast %99 : vector<4x16x1xf32> to vector<4x16x8xf32>
    %101 = arith.subf %97, %100 : vector<4x16x8xf32>
    %102 = math.exp %101 : vector<4x16x8xf32>
    %103 = vector.broadcast %91 : vector<1x16x8xf32> to vector<4x16x8xf32>
    %104 = arith.mulf %102, %103 : vector<4x16x8xf32>
    %cst_44 = arith.constant dense<0.000000e+00> : vector<4x16xf32>
    %105 = vector.multi_reduction <add>, %104, %cst_44 [2] : vector<4x16x8xf32> to vector<4x16xf32>
    %106 = vector.shape_cast %105 : vector<4x16xf32> to vector<4x16x1xf32>
    %cst_45 = arith.constant 0.000000e+00 : f32
    %107 = vector.broadcast %cst_45 : f32 to vector<4x16x1xf32>
    %108 = arith.cmpf ogt, %106, %107 : vector<4x16x1xf32>
    %cst_46 = arith.constant 1.000000e+00 : f32
    %109 = vector.broadcast %cst_46 : f32 to vector<4x16x1xf32>
    %110 = arith.select %108, %106, %109 : vector<4x16x1xi1>, vector<4x16x1xf32>
    %111 = vector.broadcast %110 : vector<4x16x1xf32> to vector<4x16x8xf32>
    %112 = arith.divf %104, %111 : vector<4x16x8xf32>
    %cst_47 = arith.constant 0.000000e+00 : f32
    %113 = vector.broadcast %cst_47 : f32 to vector<16x8xf32>
    %114 = vector.extract_strided_slice %112 {offsets = [0, 0, 0], sizes = [1, 16, 8], strides = [1, 1, 1]} : vector<4x16x8xf32> to vector<1x16x8xf32>
    %115 = vector.shape_cast %114 : vector<1x16x8xf32> to vector<16x8xf32>
    %116 = vector.extract_strided_slice %78 {offsets = [0, 0], sizes = [8, 8], strides = [1, 1]} : vector<8x32xf32> to vector<8x8xf32>
    %cst_48 = arith.constant dense<0.000000e+00> : vector<16x8xf32>
    %117 = tpu.matmul %115, %116, %cst_48 {dimension_numbers = #tpu.dot_dimension_numbers<[1], [0], [0], [1], [0, 0, 1, 1], [], []>} : vector<16x8xf32>, vector<8x8xf32>, vector<16x8xf32> -> vector<16x8xf32>
    %118 = arith.addf %113, %117 : vector<16x8xf32>
    %119 = vector.extract_strided_slice %112 {offsets = [1, 0, 0], sizes = [1, 16, 8], strides = [1, 1, 1]} : vector<4x16x8xf32> to vector<1x16x8xf32>
    %120 = vector.shape_cast %119 : vector<1x16x8xf32> to vector<16x8xf32>
    %121 = vector.extract_strided_slice %78 {offsets = [0, 8], sizes = [8, 8], strides = [1, 1]} : vector<8x32xf32> to vector<8x8xf32>
    %cst_49 = arith.constant dense<0.000000e+00> : vector<16x8xf32>
    %122 = tpu.matmul %120, %121, %cst_49 {dimension_numbers = #tpu.dot_dimension_numbers<[1], [0], [0], [1], [0, 0, 1, 1], [], []>} : vector<16x8xf32>, vector<8x8xf32>, vector<16x8xf32> -> vector<16x8xf32>
    %123 = arith.addf %118, %122 : vector<16x8xf32>
    %124 = vector.extract_strided_slice %112 {offsets = [2, 0, 0], sizes = [1, 16, 8], strides = [1, 1, 1]} : vector<4x16x8xf32> to vector<1x16x8xf32>
    %125 = vector.shape_cast %124 : vector<1x16x8xf32> to vector<16x8xf32>
    %126 = vector.extract_strided_slice %78 {offsets = [0, 16], sizes = [8, 8], strides = [1, 1]} : vector<8x32xf32> to vector<8x8xf32>
    %cst_50 = arith.constant dense<0.000000e+00> : vector<16x8xf32>
    %127 = tpu.matmul %125, %126, %cst_50 {dimension_numbers = #tpu.dot_dimension_numbers<[1], [0], [0], [1], [0, 0, 1, 1], [], []>} : vector<16x8xf32>, vector<8x8xf32>, vector<16x8xf32> -> vector<16x8xf32>
    %128 = arith.addf %123, %127 : vector<16x8xf32>
    %129 = vector.extract_strided_slice %112 {offsets = [3, 0, 0], sizes = [1, 16, 8], strides = [1, 1, 1]} : vector<4x16x8xf32> to vector<1x16x8xf32>
    %130 = vector.shape_cast %129 : vector<1x16x8xf32> to vector<16x8xf32>
    %131 = vector.extract_strided_slice %78 {offsets = [0, 24], sizes = [8, 8], strides = [1, 1]} : vector<8x32xf32> to vector<8x8xf32>
    %cst_51 = arith.constant dense<0.000000e+00> : vector<16x8xf32>
    %132 = tpu.matmul %130, %131, %cst_51 {dimension_numbers = #tpu.dot_dimension_numbers<[1], [0], [0], [1], [0, 0, 1, 1], [], []>} : vector<16x8xf32>, vector<8x8xf32>, vector<16x8xf32> -> vector<16x8xf32>
    %133 = arith.addf %128, %132 : vector<16x8xf32>
    %134 = arith.addf %74, %133 : vector<16x8xf32>
    %cst_52 = arith.constant 2.500000e-01 : f32
    %135 = vector.broadcast %cst_52 : f32 to vector<16x8xf32>
    %136 = arith.mulf %134, %135 : vector<16x8xf32>
    %c136 = arith.constant 136 : index
    %c0_53 = arith.constant 0 : index
    %137 = vector.load %arg0[%c136, %c0_53] : memref<344x128xf32, #tpu.memory_space<vmem>>, vector<1x8xf32>
    %138 = vector.broadcast %137 : vector<1x8xf32> to vector<16x8xf32>
    %139 = arith.addf %136, %138 : vector<16x8xf32>
    %c144 = arith.constant 144 : index
    %c0_54 = arith.constant 0 : index
    %140 = vector.load %arg0[%c144, %c0_54] : memref<344x128xf32, #tpu.memory_space<vmem>>, vector<8x32xf32>
    %cst_55 = arith.constant dense<0.000000e+00> : vector<16x32xf32>
    %141 = tpu.matmul %139, %140, %cst_55 {dimension_numbers = #tpu.dot_dimension_numbers<[1], [0], [0], [1], [0, 0, 1, 1], [], []>} : vector<16x8xf32>, vector<8x32xf32>, vector<16x32xf32> -> vector<16x32xf32>
    %c152 = arith.constant 152 : index
    %c0_56 = arith.constant 0 : index
    %142 = vector.load %arg0[%c152, %c0_56] : memref<344x128xf32, #tpu.memory_space<vmem>>, vector<1x32xf32>
    %143 = vector.broadcast %142 : vector<1x32xf32> to vector<16x32xf32>
    %144 = arith.addf %141, %143 : vector<16x32xf32>
    %cst_57 = arith.constant 0.000000e+00 : f32
    %145 = vector.broadcast %cst_57 : f32 to vector<16x8xf32>
    %c160 = arith.constant 160 : index
    %c0_58 = arith.constant 0 : index
    %146 = vector.load %arg0[%c160, %c0_58] : memref<344x128xf32, #tpu.memory_space<vmem>>, vector<32x32xf32>
    %c192 = arith.constant 192 : index
    %c0_59 = arith.constant 0 : index
    %147 = vector.load %arg0[%c192, %c0_59] : memref<344x128xf32, #tpu.memory_space<vmem>>, vector<4x32xf32>
    %c200 = arith.constant 200 : index
    %c0_60 = arith.constant 0 : index
    %148 = vector.load %arg0[%c200, %c0_60] : memref<344x128xf32, #tpu.memory_space<vmem>>, vector<4x32xf32>
    %cst_61 = arith.constant dense<0.000000e+00> : vector<16x32xf32>
    %149 = tpu.matmul %144, %146, %cst_61 {dimension_numbers = #tpu.dot_dimension_numbers<[1], [0], [0], [1], [0, 0, 1, 1], [], []>} : vector<16x32xf32>, vector<32x32xf32>, vector<16x32xf32> -> vector<16x32xf32>
    %cst_62 = arith.constant dense<0.000000e+00> : vector<4x16xf32>
    %150 = tpu.matmul %147, %144, %cst_62 {dimension_numbers = #tpu.dot_dimension_numbers<[1], [1], [0], [0], [0, 0, 1, 0], [], []>} : vector<4x32xf32>, vector<16x32xf32>, vector<4x16xf32> -> vector<4x16xf32>
    %cst_63 = arith.constant dense<0.000000e+00> : vector<4x16xf32>
    %151 = tpu.matmul %148, %144, %cst_63 {dimension_numbers = #tpu.dot_dimension_numbers<[1], [1], [0], [0], [0, 0, 1, 0], [], []>} : vector<4x32xf32>, vector<16x32xf32>, vector<4x16xf32> -> vector<4x16xf32>
    %152 = vector.shape_cast %150 : vector<4x16xf32> to vector<4x1x16xf32>
    %153 = vector.shape_cast %151 : vector<4x16xf32> to vector<4x16x1xf32>
    %154 = vector.broadcast %152 : vector<4x1x16xf32> to vector<4x16x16xf32>
    %155 = vector.broadcast %153 : vector<4x16x1xf32> to vector<4x16x16xf32>
    %156 = arith.addf %154, %155 : vector<4x16x16xf32>
    %cst_64 = arith.constant 0.000000e+00 : f32
    %157 = vector.broadcast %cst_64 : f32 to vector<4x16x16xf32>
    %158 = arith.cmpf ogt, %156, %157 : vector<4x16x16xf32>
    %cst_65 = arith.constant 2.000000e-01 : f32
    %159 = vector.broadcast %cst_65 : f32 to vector<4x16x16xf32>
    %160 = arith.mulf %159, %156 : vector<4x16x16xf32>
    %161 = arith.select %158, %156, %160 : vector<4x16x16xi1>, vector<4x16x16xf32>
    %162 = vector.shape_cast %12 : vector<16x16xf32> to vector<1x16x16xf32>
    %cst_66 = arith.constant 0.000000e+00 : f32
    %163 = vector.broadcast %cst_66 : f32 to vector<1x16x16xf32>
    %164 = arith.cmpf ogt, %162, %163 : vector<1x16x16xf32>
    %cst_67 = arith.constant -1.000000e+30 : f32
    %165 = vector.shape_cast %164 : vector<1x16x16xi1> to vector<1x16x16xi1>
    %166 = vector.broadcast %165 : vector<1x16x16xi1> to vector<4x16x16xi1>
    %167 = vector.broadcast %cst_67 : f32 to vector<4x16x16xf32>
    %168 = arith.select %166, %161, %167 : vector<4x16x16xi1>, vector<4x16x16xf32>
    %cst_68 = arith.constant dense<0xFF800000> : vector<4x16xf32>
    %169 = vector.multi_reduction <maximumf>, %168, %cst_68 [2] : vector<4x16x16xf32> to vector<4x16xf32>
    %170 = vector.shape_cast %169 : vector<4x16xf32> to vector<4x16x1xf32>
    %171 = vector.broadcast %170 : vector<4x16x1xf32> to vector<4x16x16xf32>
    %172 = arith.subf %168, %171 : vector<4x16x16xf32>
    %173 = math.exp %172 : vector<4x16x16xf32>
    %174 = vector.broadcast %162 : vector<1x16x16xf32> to vector<4x16x16xf32>
    %175 = arith.mulf %173, %174 : vector<4x16x16xf32>
    %cst_69 = arith.constant dense<0.000000e+00> : vector<4x16xf32>
    %176 = vector.multi_reduction <add>, %175, %cst_69 [2] : vector<4x16x16xf32> to vector<4x16xf32>
    %177 = vector.shape_cast %176 : vector<4x16xf32> to vector<4x16x1xf32>
    %cst_70 = arith.constant 0.000000e+00 : f32
    %178 = vector.broadcast %cst_70 : f32 to vector<4x16x1xf32>
    %179 = arith.cmpf ogt, %177, %178 : vector<4x16x1xf32>
    %cst_71 = arith.constant 1.000000e+00 : f32
    %180 = vector.broadcast %cst_71 : f32 to vector<4x16x1xf32>
    %181 = arith.select %179, %177, %180 : vector<4x16x1xi1>, vector<4x16x1xf32>
    %182 = vector.broadcast %181 : vector<4x16x1xf32> to vector<4x16x16xf32>
    %183 = arith.divf %175, %182 : vector<4x16x16xf32>
    %cst_72 = arith.constant 0.000000e+00 : f32
    %184 = vector.broadcast %cst_72 : f32 to vector<16x8xf32>
    %185 = vector.extract_strided_slice %183 {offsets = [0, 0, 0], sizes = [1, 16, 16], strides = [1, 1, 1]} : vector<4x16x16xf32> to vector<1x16x16xf32>
    %186 = vector.shape_cast %185 : vector<1x16x16xf32> to vector<16x16xf32>
    %187 = vector.extract_strided_slice %149 {offsets = [0, 0], sizes = [16, 8], strides = [1, 1]} : vector<16x32xf32> to vector<16x8xf32>
    %cst_73 = arith.constant dense<0.000000e+00> : vector<16x8xf32>
    %188 = tpu.matmul %186, %187, %cst_73 {dimension_numbers = #tpu.dot_dimension_numbers<[1], [0], [0], [1], [0, 0, 1, 1], [], []>} : vector<16x16xf32>, vector<16x8xf32>, vector<16x8xf32> -> vector<16x8xf32>
    %189 = arith.addf %184, %188 : vector<16x8xf32>
    %190 = vector.extract_strided_slice %183 {offsets = [1, 0, 0], sizes = [1, 16, 16], strides = [1, 1, 1]} : vector<4x16x16xf32> to vector<1x16x16xf32>
    %191 = vector.shape_cast %190 : vector<1x16x16xf32> to vector<16x16xf32>
    %192 = vector.extract_strided_slice %149 {offsets = [0, 8], sizes = [16, 8], strides = [1, 1]} : vector<16x32xf32> to vector<16x8xf32>
    %cst_74 = arith.constant dense<0.000000e+00> : vector<16x8xf32>
    %193 = tpu.matmul %191, %192, %cst_74 {dimension_numbers = #tpu.dot_dimension_numbers<[1], [0], [0], [1], [0, 0, 1, 1], [], []>} : vector<16x16xf32>, vector<16x8xf32>, vector<16x8xf32> -> vector<16x8xf32>
    %194 = arith.addf %189, %193 : vector<16x8xf32>
    %195 = vector.extract_strided_slice %183 {offsets = [2, 0, 0], sizes = [1, 16, 16], strides = [1, 1, 1]} : vector<4x16x16xf32> to vector<1x16x16xf32>
    %196 = vector.shape_cast %195 : vector<1x16x16xf32> to vector<16x16xf32>
    %197 = vector.extract_strided_slice %149 {offsets = [0, 16], sizes = [16, 8], strides = [1, 1]} : vector<16x32xf32> to vector<16x8xf32>
    %cst_75 = arith.constant dense<0.000000e+00> : vector<16x8xf32>
    %198 = tpu.matmul %196, %197, %cst_75 {dimension_numbers = #tpu.dot_dimension_numbers<[1], [0], [0], [1], [0, 0, 1, 1], [], []>} : vector<16x16xf32>, vector<16x8xf32>, vector<16x8xf32> -> vector<16x8xf32>
    %199 = arith.addf %194, %198 : vector<16x8xf32>
    %200 = vector.extract_strided_slice %183 {offsets = [3, 0, 0], sizes = [1, 16, 16], strides = [1, 1, 1]} : vector<4x16x16xf32> to vector<1x16x16xf32>
    %201 = vector.shape_cast %200 : vector<1x16x16xf32> to vector<16x16xf32>
    %202 = vector.extract_strided_slice %149 {offsets = [0, 24], sizes = [16, 8], strides = [1, 1]} : vector<16x32xf32> to vector<16x8xf32>
    %cst_76 = arith.constant dense<0.000000e+00> : vector<16x8xf32>
    %203 = tpu.matmul %201, %202, %cst_76 {dimension_numbers = #tpu.dot_dimension_numbers<[1], [0], [0], [1], [0, 0, 1, 1], [], []>} : vector<16x16xf32>, vector<16x8xf32>, vector<16x8xf32> -> vector<16x8xf32>
    %204 = arith.addf %199, %203 : vector<16x8xf32>
    %205 = arith.addf %145, %204 : vector<16x8xf32>
    %cst_77 = arith.constant 2.500000e-01 : f32
    %206 = vector.broadcast %cst_77 : f32 to vector<16x8xf32>
    %207 = arith.mulf %205, %206 : vector<16x8xf32>
    %c208 = arith.constant 208 : index
    %c0_78 = arith.constant 0 : index
    %208 = vector.load %arg0[%c208, %c0_78] : memref<344x128xf32, #tpu.memory_space<vmem>>, vector<1x8xf32>
    %209 = vector.broadcast %208 : vector<1x8xf32> to vector<16x8xf32>
    %210 = arith.addf %207, %209 : vector<16x8xf32>
    %c216 = arith.constant 216 : index
    %c0_79 = arith.constant 0 : index
    %211 = vector.load %arg0[%c216, %c0_79] : memref<344x128xf32, #tpu.memory_space<vmem>>, vector<8x32xf32>
    %cst_80 = arith.constant dense<0.000000e+00> : vector<16x32xf32>
    %212 = tpu.matmul %210, %211, %cst_80 {dimension_numbers = #tpu.dot_dimension_numbers<[1], [0], [0], [1], [0, 0, 1, 1], [], []>} : vector<16x8xf32>, vector<8x32xf32>, vector<16x32xf32> -> vector<16x32xf32>
    %c224 = arith.constant 224 : index
    %c0_81 = arith.constant 0 : index
    %213 = vector.load %arg0[%c224, %c0_81] : memref<344x128xf32, #tpu.memory_space<vmem>>, vector<1x32xf32>
    %214 = vector.broadcast %213 : vector<1x32xf32> to vector<16x32xf32>
    %215 = arith.addf %212, %214 : vector<16x32xf32>
    %c232 = arith.constant 232 : index
    %c0_82 = arith.constant 0 : index
    %216 = vector.load %arg0[%c232, %c0_82] : memref<344x128xf32, #tpu.memory_space<vmem>>, vector<32x32xf32>
    %cst_83 = arith.constant dense<0.000000e+00> : vector<16x32xf32>
    %217 = tpu.matmul %215, %216, %cst_83 {dimension_numbers = #tpu.dot_dimension_numbers<[1], [0], [0], [1], [0, 0, 1, 1], [], []>} : vector<16x32xf32>, vector<32x32xf32>, vector<16x32xf32> -> vector<16x32xf32>
    %c264 = arith.constant 264 : index
    %c0_84 = arith.constant 0 : index
    %218 = vector.load %arg0[%c264, %c0_84] : memref<344x128xf32, #tpu.memory_space<vmem>>, vector<1x32xf32>
    %219 = vector.broadcast %218 : vector<1x32xf32> to vector<16x32xf32>
    %220 = arith.addf %217, %219 : vector<16x32xf32>
    %cst_85 = arith.constant 0.000000e+00 : f32
    %221 = vector.broadcast %cst_85 : f32 to vector<16x32xf32>
    %222 = arith.maximumf %220, %221 : vector<16x32xf32>
    %cst_86 = arith.constant dense<0.000000e+00> : vector<32xf32>
    %223 = vector.multi_reduction <add>, %5, %cst_86 [0] : vector<8x32xf32> to vector<32xf32>
    %224 = vector.shape_cast %223 : vector<32xf32> to vector<1x32xf32>
    %cst_87 = arith.constant 8.000000e+00 : f32
    %225 = vector.broadcast %cst_87 : f32 to vector<1x32xf32>
    %226 = arith.divf %224, %225 : vector<1x32xf32>
    %cst_88 = arith.constant dense<0.000000e+00> : vector<32xf32>
    %227 = vector.multi_reduction <add>, %222, %cst_88 [0] : vector<16x32xf32> to vector<32xf32>
    %228 = vector.shape_cast %227 : vector<32xf32> to vector<1x32xf32>
    %cst_89 = arith.constant 1.600000e+01 : f32
    %229 = vector.broadcast %cst_89 : f32 to vector<1x32xf32>
    %230 = arith.divf %228, %229 : vector<1x32xf32>
    %c272 = arith.constant 272 : index
    %c0_90 = arith.constant 0 : index
    %231 = vector.load %arg0[%c272, %c0_90] : memref<344x128xf32, #tpu.memory_space<vmem>>, vector<32x32xf32>
    %cst_91 = arith.constant dense<0.000000e+00> : vector<1x32xf32>
    %232 = tpu.matmul %226, %231, %cst_91 {dimension_numbers = #tpu.dot_dimension_numbers<[1], [0], [0], [1], [0, 0, 1, 1], [], []>} : vector<1x32xf32>, vector<32x32xf32>, vector<1x32xf32> -> vector<1x32xf32>
    %c304 = arith.constant 304 : index
    %c0_92 = arith.constant 0 : index
    %233 = vector.load %arg0[%c304, %c0_92] : memref<344x128xf32, #tpu.memory_space<vmem>>, vector<32x32xf32>
    %cst_93 = arith.constant dense<0.000000e+00> : vector<1x32xf32>
    %234 = tpu.matmul %230, %233, %cst_93 {dimension_numbers = #tpu.dot_dimension_numbers<[1], [0], [0], [1], [0, 0, 1, 1], [], []>} : vector<1x32xf32>, vector<32x32xf32>, vector<1x32xf32> -> vector<1x32xf32>
    %235 = arith.addf %232, %234 : vector<1x32xf32>
    %c336 = arith.constant 336 : index
    %c0_94 = arith.constant 0 : index
    %236 = vector.load %arg0[%c336, %c0_94] : memref<344x128xf32, #tpu.memory_space<vmem>>, vector<1x32xf32>
    %237 = arith.addf %235, %236 : vector<1x32xf32>
    %c0_95 = arith.constant 0 : index
    %c0_96 = arith.constant 0 : index
    %238 = vector.load %arg5[%c0_95, %c0_96] : memref<1x32xf32, #tpu.memory_space<vmem>>, vector<1x32xf32>
    tpu.vector_store %arg5[%c0_95, %c0_96], %237 {strides = array<i32>} : memref<1x32xf32, #tpu.memory_space<vmem>>, vector<1x32xf32>,
    return
  }
}

</mosaic_0001>

<bundles_post_ra>
// kernel: tpu_custom_call.1
= control target key start
LH: loop header
LB: loop body
LE: loop exit
PB: predicated region body
PF: predicated region fallthrough
CT: control target
= control target key end

     0   :  { %10 = vsyncpa [#allocation3], 0  ;;  %s4380_s0 = inlined_call_operand.hbm [shape: f32[344,128], index: 0, kind: input, shape index: {}]   ;;  %s4381_s1 = inlined_call_operand.hbm [shape: f32[8,8], index: 1, kind: input, shape index: {}]   ;;  %s4382_s2 = inlined_call_operand.vmem [shape: f32[16,16], index: 2, kind: input, shape index: {}]   ;;  %s4383_s3 = inlined_call_operand.vmem [shape: f32[16,16], index: 3, kind: input, shape index: {}]   ;;  %s4384_s4 = inlined_call_operand.vmem [shape: f32[16,8], index: 4, kind: input, shape index: {}]   ;;  %s4385_s5 = inlined_call_operand.hbm [shape: f32[1,32], index: 5, kind: output, shape index: {}]  }
   0x1   :  { %11 = vsyncpa [#allocation6], 0 }
   0x2   :  { %12 = vsyncpa [#allocation4], 0  ;;  %s3872_s18 = smov [#allocation2]   ;;  %s3800_s22 = scalar_lea.hbm %s4380_s0, 5504 }
   0x3   :  { %s18_s19 = sshll.u32 %s3872_s18, 4  ;;  %p3801_p0 = scmp.ne.s32.totalorder %s4380_s0, %s3800_s22  ;;  %s19_s19 = int_to_ptr.vmem [resolvable:$true] %s18_s19 }
   0x4   :  { %p3804_p1 = scmp.lt.u32.totalorder %s3800_s22, %s4380_s0 }
   0x6   :  { %p3806_p2 = pnand %p3804_p1, %p3801_p0 }
   0x8   :  { %3809 = shalt.err (!%p3806_p2)
}
   0x9   :  { %s3810_s27 = scalar_lea.vmem %s19_s19, 5504  ;;  %p3815_p4 = scmp.lt.s32.totalorder %s19_s19, %s19_s19 }
   0xa   :  { %p3811_p3 = scmp.ne.s32.totalorder %s19_s19, %s3810_s27  ;;  %p3816_p5 = scmp.lt.s32.totalorder %s3810_s27, %s3810_s27 }
   0xc   :  { %p3817_p6 = por %p3816_p5, %p3815_p4 }
   0xe   :  { %p3818_p7 = pnand %p3817_p6, %p3811_p3 }
  0x10   :  { %3821 = shalt.err (!%p3818_p7)
}
  0x11   :  { %s3873_s28 = smov 128   ;;  %s3874_s29 = smov 8  }
  0x12   :  { %24 = dma.hbm_to_vmem [thread:$0]  %s4380_s0, 5504, %s19_s19, [#allocation3], %s3873_s28, %s3873_s28, %s3874_s29  }
  0x13   :  { %s3875_s7 = smov [#allocation5]   ;;  %s3822_s11 = scalar_lea.hbm %s4381_s1, 128 }
  0x14   :  { %s31_s8 = sshll.u32 %s3875_s7, 4  ;;  %p3823_p8 = scmp.ne.s32.totalorder %s4381_s1, %s3822_s11  ;;  %s32_s8 = int_to_ptr.vmem [resolvable:$true] %s31_s8 }
  0x15   :  { %p3826_p9 = scmp.lt.u32.totalorder %s3822_s11, %s4381_s1 }
  0x17   :  { %p3828_p10 = pnand %p3826_p9, %p3823_p8 }
  0x19   :  { %3831 = shalt.err (!%p3828_p10)
}
  0x1a   :  { %s3832_s16 = scalar_lea.vmem %s32_s8, 128  ;;  %p3837_p12 = scmp.lt.s32.totalorder %s32_s8, %s32_s8 }
  0x1b   :  { %p3833_p11 = scmp.ne.s32.totalorder %s32_s8, %s3832_s16  ;;  %p3838_p13 = scmp.lt.s32.totalorder %s3832_s16, %s3832_s16 }
  0x1d   :  { %p3839_p0 = por %p3838_p13, %p3837_p12 }
  0x1f   :  { %p3840_p1 = pnand %p3839_p0, %p3833_p11 }
  0x21   :  { %3843 = shalt.err (!%p3840_p1)
}
  0x22   :  { %34 = dma.hbm_to_vmem [thread:$0]  %s4381_s1, 128, %s32_s8, [#allocation6]  }
  0x23   :  { %3866 = dma.done.wait [#allocation3], 5504  }
  0x24   :  { %3867 = vsyncadd [#allocation3], 4294961792 }
  0x25   :  { %3868 = dma.done.wait [#allocation6], 128  }
  0x26   :  { %3869 = vsyncadd [#allocation6], 4294967168  ;;  %v3876_v0 = vmov 0.0   ;;  %vm3877_vm0 = vmmov 0   ;;  %vm137_vm1 = vcmask 130048   ;;  %v130_v1 = vld [vmem:[#allocation2 + $0x10] sm:$0xff]  ;;  %v461_v34 = vlaneseq }
  0x27   :  { %3338 = vmatprep.subr.mxu0 %v3876_v0  ;;  %3340 = vmatprep.mubr.msk.f32.mxu0 %vm3877_vm0, %v3876_v0  ;;  %v131_v2 = vld [vmem:[#allocation2 + $0x18] sm:$0xff]  ;;  %v128_v3 = vld [vmem:[%s4382_s2] sm:$0xff]  ;;  %vm54_vm2 = vcmask 64512   ;;  %v223_v7 = vld [vmem:[#allocation2 + $0x28] sm:$0xff]  ;;  %v3878_v14 = vmov 0.0|0.0   ;;  %vm229_vm3 = vcmask 261120  }
  0x28   :  { %v3542_v4 = vpack.c.bf16 %v131_v2, %v130_v1  ;;  %3347 = vmatprep.mubr.msk.f32.mxu1 %vm137_vm1, %v128_v3  ;;  %v48_v5 = vld [vmem:[#allocation2] sm:$0xff]  ;;  %v47_v6 = vld [vmem:[#allocation5] sm:$0xff]  ;;  %v224_v8 = vld [vmem:[#allocation2 + $0x30] sm:$0xff]  ;;  %v462_v37 = vshrl.u32 %v461_v34, 7  ;;  %v3879_v54 = vmov 1966171168  }
  0x29   :  { %3339 = vmatpush3.msra.mxu0 %v48_v5  ;;  %v225_v9 = vld [vmem:[#allocation2 + $0x38] sm:$0xff]  ;;  %v3546_v10 = vpack.c.bf16 %v224_v8, %v223_v7  ;;  %v226_v11 = vld [vmem:[#allocation2 + $0x40] sm:$0xff]  ;;  %v129_v12 = vld [vmem:[%s4382_s2 + $0x8] sm:$0xff]  ;;  %v459_v55 = vunpack.c.l.s4 %v3879_v54  ;;  %s3880_s24 = smov 120   ;;  %s3881_s25 = smov 104  }
  0x2a   :  { %3543 = vmatprep.subr.bf16.mxu1 %v3542_v4  ;;  %3341 = vmatmul.mubr.msk.f32.vlgmr.msra.gmra.mrb[0].mxu0 %vm54_vm2, %v47_v6  ;;  %v3550_v13 = vpack.c.bf16 %v226_v11, %v225_v9  ;;  %v3170_v17 = vld [vmem:[#allocation2 + $0x20] ss:$0 sm:$0xff]  ;;  %vm3956_vm4 = vmpackc.low %vm229_vm3, %vm229_vm3  ;;  %v1054_v24 = vld [vmem:[#allocation2 + $0x58] sm:$0xff]  ;;  %v3991_v40 = vsub.s32 0, %v462_v37  ;;  %v3993_v41 = vsub.s32 1, %v462_v37  ;;  %v3997_v48 = vsub.s32 2, %v462_v37 }
  0x2b   :  { %3545 = vmatpush3.bf16.msra.mxu1 %v3542_v4  ;;  %3547 = vmatprep.subr.bf16.mxu0 %v3546_v10  ;;  %v1055_v25 = vld [vmem:[#allocation2 + $0x60] sm:$0xff]  ;;  %v228_v26 = vld [vmem:[#allocation2 + $0x50] sm:$0xf]  ;;  %v227_v27 = vld [vmem:[#allocation2 + $0x48] sm:$0xf]  ;;  %v4000_v50 = vsub.s32 3, %v462_v37  ;;  %v460_v56 = vunpack.c.0.s8 %v459_v55 }
  0x2c   :  { %3549 = vmatpush3.bf16.msra.mxu0 %v3546_v10  ;;  %3554 = vmatprep.subr.bf16.mxu1 %v3878_v14  ;;  %v3579_v28 = vpack.c.bf16 %v1055_v25, %v1054_v24  ;;  %v1056_v29 = vld [vmem:[#allocation2 + $0x68] sm:$0xff]  ;;  %v1057_v30 = vld [vmem:[#allocation2 + $0x70] sm:$0xff]  ;;  %v4015_v1 = vld [vmem:[%s4383_s3] sm:$0xff]  ;;  %s3882_s26 = smov 112  }
  0x2d   :  { %3551 = vmatprep.subr.bf16.mxu0 %v3550_v13  ;;  %v3582_v31 = vpack.c.bf16 %v1057_v30, %v1056_v29  ;;  %v3168_v32 = vld [vmem:[#allocation2 + $0x8] ss:$0 sm:$0xff]  ;;  %v4005_v57 = vsub.s32 %v460_v56, %v462_v37  ;;  %vm578_vm5 = vcmp.gt.f32.partialorder %v4015_v1, 0.0 }
  0x2e   :  { %3348 = vmatmul.mubr.msk.f32.vlgmr.msra.gmra.mrb[0].mxu1 %vm137_vm1, %v129_v12  ;;  %v4020_v6 = vld [vmem:[%s4383_s3 + $0x8] sm:$0xff] }
  0x2f   :  { %3365 = vmatprep.mubr.msk.f32.mxu1 %vm3877_vm0, %v3876_v0  ;;  %vm579_vm8 = vcmp.gt.f32.partialorder %v4020_v6, 0.0 }
  0x30   :  { %3553 = vmatpush3.bf16.msra.mxu0 %v3550_v13 }
  0x31   :  { %3558 = vmatprep.subr.bf16.mxu0 %v3878_v14 }
  0xfd   :  { %v124_v15 = vpop.f32.mrb[0].mxu0 }
  0xfe   :  { %v3342_v16 = vpop.f32.mrb[1].mxu0  ;;  %v3978_v33 = vadd.f32 %v3168_v32, %v124_v15 }
 0x101   :  { %v3349_v18 = vpop.f32.mrb[0].mxu1 }
 0x102   :  { %v216_v19 = vadd.f32 %v3349_v18, %v3170_v17  ;;  %v210_v20 = vpop.f32.mrb[1].mxu1 }
 0x103   :  { %v211_v21 = vadd.f32 %v3170_v17, %v210_v20 }
 0x105   :  { %v3960_v23 = vpack.c.bf16 %v216_v19, %v211_v21  ;;  %3358 = vmatprep.mubr.msk.f32.mxu0 %vm229_vm3, %v211_v21 }
 0x106   :  { %3359 = vmatmul.mubr.msk.f32.vlgmr.msra.gmra.mrb[2].mxu0 %vm229_vm3, %v216_v19 }
 0x107   :  { %3557 = vmatpush3.bf16.xpose.msk.msra.mxu1 %vm3956_vm4, %v3960_v23  ;;  %3561 = vmatpush3.bf16.xpose.msk.msra.mxu0 %vm3956_vm4, %v3960_v23 }
 0x108   :  { %3372 = vmatprep.mubr.msk.f32.mxu0 %vm3877_vm0, %v3876_v0  ;;  %3578 = vmatprep.subr.bf16.mxu0 %v3878_v14 }
 0x10e   :  { %3373 = vmatmul.mubr.msk.f32.vlgmr.msra.gmra.mrb[4].mxu0 %vm229_vm3, %v228_v26  ;;  %3366 = vmatmul.mubr.msk.f32.vlgmr.msra.gmra.mrb[2].mxu1 %vm229_vm3, %v227_v27 }
 0x10f   :  { %3580 = vmatpush3.bf16.msra.mxu0 %v3579_v28  ;;  %3411 = vmatprep.mubr.msk.f32.mxu0 %vm3877_vm0, %v3876_v0 }
 0x110   :  { %3581 = vmatprep.subr.bf16.mxu0 %v3878_v14 }
 0x113   :  { %3583 = vmatpush3.bf16.msra.mxu0 %v3582_v31 }
 0x114   :  { %3414 = vmatprep.subr.mxu0 %v3876_v0 }
 0x116   :  { %3412 = vmatmul.mubr.msk.f32.vlgmr.msra.gmra.mrb[6].mxu0 %vm229_vm3, %v3978_v33 }
 0x117   :  { %3416 = vmatprep.mubr.msk.f32.mxu0 %vm3877_vm0, %v3876_v0 }
 0x11c   :  { %3415 = vmatpush3.xpose.msk.msra.mxu0 %vm229_vm3, %v3978_v33 }
 0x1d9   :  { %v3360_v35 = vpop.f32.mrb[2].mxu0 }
 0x1da   :  { %v302_v36 = vpop.f32.mrb[3].mxu0 }
 0x1db   :  { %v3987_v38 = vpack.i.bf16 %v3360_v35, %v302_v36  ;;  %v3989_v39 = vpack.c.bf16 %v3360_v35, %v302_v36 }
 0x1e1   :  { %v453_v42 = vpop.f32.mrb[4].mxu0  ;;  %v380_v43 = vpop.f32.mrb[2].mxu1 }
 0x1e2   :  { %v3374_v44 = vpop.f32.mrb[5].mxu0  ;;  %v496_v45 = vrot.slane %v453_v42, %v3993_v41  ;;  %v485_v46 = vrot.slane %v453_v42, %v3991_v40  ;;  %v3367_v47 = vpop.f32.mrb[3].mxu1  ;;  %v507_v49 = vrot.slane %v453_v42, %v3997_v48  ;;  %v518_v51 = vrot.slane %v453_v42, %v4000_v50 }
 0x1e3   :  { %v464_v58 = vrot.slane %v380_v43, %v4005_v57 }
 0x1e4   :  { %498 = vbcast.lane.b32.xlu0 %v496_v45, 256  ;;  %487 = vbcast.lane.b32.xlu1 %v485_v46, 256 }
 0x1e5   :  { %v465_v59 = vcombine.high %v464_v58, %v464_v58  ;;  %v472_v60 = vrot.slane %v464_v58, %v4005_v57 }
 0x1e7   :  { %v479_v61 = vrot.slane %v465_v59, %v4005_v57  ;;  %v529_v63 = vrot.slane %v472_v60, %v3991_v40  ;;  %v480_v7 = vcombine.high %v472_v60, %v472_v60 }
 0x1e8   :  { %502 = vbcast.lane.b32.xlu0 %v496_v45, 264  ;;  %491 = vbcast.lane.b32.xlu1 %v485_v46, 264 }
 0x1e9   :  { %v4003_v52 = vpop.f32.mrb[6].mxu0  ;;  %v533_v62 = vrot.slane %v479_v61, %v3991_v40  ;;  %v537_v18 = vrot.slane %v480_v7, %v3991_v40  ;;  %v481_v19 = vcombine.high %v479_v61, %v479_v61 }
 0x1ea   :  { %v3413_v53 = vpop.f32.mrb[7].mxu0 }
 0x1eb   :  { %v541_v32 = vrot.slane %v481_v19, %v3991_v40 }
 0x1ec   :  { %509 = vbcast.lane.b32.xlu0 %v507_v49, 256  ;;  %513 = vbcast.lane.b32.xlu1 %v507_v49, 264 }
 0x1f0   :  { %520 = vbcast.lane.b32.xlu0 %v518_v51, 256  ;;  %524 = vbcast.lane.b32.xlu1 %v518_v51, 264 }
 0x256   :  { %v499_v2 = vpop.permute.xlu0 %498  ;;  %v488_v3 = vpop.permute.xlu1 %487 }
 0x257   :  { %v548_v4 = vadd.f32 %v533_v62, %v499_v2  ;;  %v546_v5 = vadd.f32 %v529_v63, %v488_v3 }
 0x259   :  { %v564_v8 = vmul.f32 0.2, %v548_v4  ;;  %v562_v9 = vmul.f32 0.2, %v546_v5  ;;  %vm556_vm6 = vcmp.gt.f32.partialorder %v548_v4, 0.0  ;;  %vm554_vm7 = vcmp.gt.f32.partialorder %v546_v5, 0.0 }
 0x25a   :  { %v503_v10 = vpop.permute.xlu0 %502  ;;  %v492_v11 = vpop.permute.xlu1 %491 }
 0x25b   :  { %v549_v12 = vadd.f32 %v533_v62, %v503_v10  ;;  %v547_v13 = vadd.f32 %v529_v63, %v492_v11  ;;  %v572_v15 = vsel %vm556_vm6, %v548_v4, %v564_v8  ;;  %v570_v16 = vsel %vm554_vm7, %v546_v5, %v562_v9 }
 0x25c   :  { %v586_v17 = vsel %vm578_vm5, %v572_v15, -1e+30  ;;  %v584_v20 = vsel %vm578_vm5, %v570_v16, -1e+30 }
 0x25d   :  { %v565_v21 = vmul.f32 0.2, %v549_v12  ;;  %v563_v24 = vmul.f32 0.2, %v547_v13  ;;  %v598_v25 = vsel %vm137_vm1, %v586_v17, -inf  ;;  %vm557_vm9 = vcmp.gt.f32.partialorder %v549_v12, 0.0 }
 0x25e   :  { %599 = vmax.xlane.f32.xlu0 %v598_v25  ;;  %v510_v26 = vpop.permute.xlu0 %509  ;;  %v514_v27 = vpop.permute.xlu1 %513  ;;  %vm555_vm10 = vcmp.gt.f32.partialorder %v547_v13, 0.0  ;;  %v592_v35 = vsel %vm137_vm1, %v584_v20, -inf }
 0x25f   :  { %v550_v28 = vadd.f32 %v537_v18, %v510_v26  ;;  %v551_v29 = vadd.f32 %v537_v18, %v514_v27  ;;  %v573_v30 = vsel %vm557_vm9, %v549_v12, %v565_v21  ;;  %v571_v31 = vsel %vm555_vm10, %v547_v13, %v563_v24 }
 0x260   :  { %v587_v34 = vsel %vm579_vm8, %v573_v30, -1e+30  ;;  %v585_v36 = vsel %vm579_vm8, %v571_v31, -1e+30 }
 0x261   :  { %v566_v37 = vmul.f32 0.2, %v550_v28  ;;  %v567_v42 = vmul.f32 0.2, %v551_v29  ;;  %v601_v43 = vsel %vm137_vm1, %v587_v34, -inf  ;;  %vm558_vm11 = vcmp.gt.f32.partialorder %v550_v28, 0.0 }
 0x262   :  { %v521_v44 = vpop.permute.xlu0 %520  ;;  %602 = vmax.xlane.f32.xlu1 %v601_v43  ;;  %593 = vmax.xlane.f32.xlu0 %v592_v35  ;;  %v525_v45 = vpop.permute.xlu1 %524  ;;  %vm559_vm12 = vcmp.gt.f32.partialorder %v551_v29, 0.0  ;;  %v595_v54 = vsel %vm137_vm1, %v585_v36, -inf }
 0x263   :  { %v552_v46 = vadd.f32 %v541_v32, %v521_v44  ;;  %v553_v47 = vadd.f32 %v541_v32, %v525_v45  ;;  %v574_v49 = vsel %vm558_vm11, %v550_v28, %v566_v37  ;;  %v575_v51 = vsel %vm559_vm12, %v551_v29, %v567_v42 }
 0x264   :  { %v588_v53 = vsel %vm578_vm5, %v574_v49, -1e+30  ;;  %v589_v59 = vsel %vm579_vm8, %v575_v51, -1e+30 }
 0x265   :  { %v568_v55 = vmul.f32 0.2, %v552_v46  ;;  %v569_v56 = vmul.f32 0.2, %v553_v47  ;;  %v604_v58 = vsel %vm137_vm1, %v588_v53, -inf  ;;  %vm560_vm13 = vcmp.gt.f32.partialorder %v552_v46, 0.0 }
 0x266   :  { %605 = vmax.xlane.f32.xlu1 %v604_v58  ;;  %596 = vmax.xlane.f32.xlu0 %v595_v54  ;;  %vm561_vm14 = vcmp.gt.f32.partialorder %v553_v47, 0.0  ;;  %v607_v2 = vsel %vm137_vm1, %v589_v59, -inf }
 0x267   :  { %v576_v60 = vsel %vm560_vm13, %v552_v46, %v568_v55  ;;  %v577_v61 = vsel %vm561_vm14, %v553_v47, %v569_v56 }
 0x268   :  { %v590_v62 = vsel %vm578_vm5, %v576_v60, -1e+30  ;;  %v591_v3 = vsel %vm579_vm8, %v577_v61, -1e+30 }
 0x269   :  { %v610_v63 = vsel %vm137_vm1, %v590_v62, -inf  ;;  %v613_v4 = vsel %vm137_vm1, %v591_v3, -inf }
 0x26a   :  { %611 = vmax.xlane.f32.xlu1 %v610_v63  ;;  %608 = vmax.xlane.f32.xlu0 %v607_v2 }
 0x26e   :  { %614 = vmax.xlane.f32.xlu0 %v613_v4 }
 0x27b   :  { %3673 = vrot.lane.b32.xlu1 %v3987_v38, %s3880_s24 }
 0x2eb   :  { %v600_v5 = vpop.xlane.xlu0 %599 }
 0x2ec   :  { %v618_v7 = vsub.f32 %v586_v17, %v600_v5 }
 0x2ee   :  { %v628_v8 = vmul.f32 1.442695, %v618_v7 }
 0x2ef   :  { %v594_v9 = vpop.xlane.xlu0 %593  ;;  %v603_v10 = vpop.xlane.xlu1 %602 }
 0x2f0   :  { %3702 = vpow2.f32 %v628_v8  ;;  %v616_v11 = vsub.f32 %v584_v20, %v594_v9  ;;  %v619_v12 = vsub.f32 %v587_v34, %v603_v10  ;;  %v1058_v9 = vld [vmem:[#allocation2 + $0x78] sm:$0xf] }
 0x2f1   :  { %3417 = vmatmul.mubr.msk.f32.vlgmr.msra.gmra.mrb[8].mxu0 %vm229_vm3, %v1058_v9 }
 0x2f2   :  { %v624_v13 = vmul.f32 1.442695, %v616_v11  ;;  %v630_v15 = vmul.f32 1.442695, %v619_v12 }
 0x2f3   :  { %v597_v16 = vpop.xlane.xlu0 %596  ;;  %v606_v18 = vpop.xlane.xlu1 %605 }
 0x2f4   :  { %3704 = vpow2.f32 %v624_v13  ;;  %v617_v19 = vsub.f32 %v585_v36, %v597_v16  ;;  %v620_v21 = vsub.f32 %v588_v53, %v606_v18 }
 0x2f5   :  { %3706 = vpow2.f32 %v630_v15 }
 0x2f6   :  { %v626_v24 = vmul.f32 1.442695, %v617_v19  ;;  %v632_v25 = vmul.f32 1.442695, %v620_v21 }
 0x2f7   :  { %v609_v26 = vpop.xlane.xlu0 %608  ;;  %v612_v27 = vpop.xlane.xlu1 %611 }
 0x2f8   :  { %3708 = vpow2.f32 %v626_v24  ;;  %v621_v17 = vsub.f32 %v589_v59, %v609_v26  ;;  %v622_v28 = vsub.f32 %v590_v62, %v612_v27 }
 0x2f9   :  { %3710 = vpow2.f32 %v632_v25 }
 0x2fa   :  { %v3703_v29 = vpop.eup %3702  ;;  %v634_v30 = vmul.f32 1.442695, %v621_v17  ;;  %v636_v20 = vmul.f32 1.442695, %v622_v28 }
 0x2fb   :  { %v615_v31 = vpop.xlane.xlu0 %614  ;;  %v3674_v32 = vpop.permute.xlu1 %3673  ;;  %v4053_v34 = vmul.f32 %v3703_v29, %v4015_v1 }
 0x2fc   :  { %3712 = vpow2.f32 %v634_v30  ;;  %v623_v35 = vsub.f32 %v591_v3, %v615_v31  ;;  %v3676_v36 = vunpack.i.h.bf16 %v3674_v32  ;;  %v3675_v37 = vunpack.i.l.bf16 %v3674_v32 }
 0x2fd   :  { %3714 = vpow2.f32 %v636_v20  ;;  %v654_v42 = vsel %vm137_vm1, %v4053_v34, 0.0 }
 0x2fe   :  { %v3705_v43 = vpop.eup %3704  ;;  %v638_v44 = vmul.f32 1.442695, %v623_v35  ;;  %v3562_v45 = vpack.c.bf16 %v3676_v36, %v3675_v37  ;;  %655 = vadd.xlane.f32.xlu1 %v654_v42 }
 0x2ff   :  { %v3707_v46 = vpop.eup %3706  ;;  %v4058_v47 = vmul.f32 %v3705_v43, %v4015_v1 }
 0x300   :  { %3563 = vmatprep.subr.bf16.mxu1 %v3562_v45  ;;  %v4061_v49 = vmul.f32 %v3707_v46, %v4020_v6  ;;  %3716 = vpow2.f32 %v638_v44 }
 0x301   :  { %3565 = vmatpush3.bf16.msra.mxu1 %v3562_v45  ;;  %v648_v51 = vsel %vm137_vm1, %v4058_v47, 0.0 }
 0x302   :  { %v3709_v53 = vpop.eup %3708  ;;  %649 = vadd.xlane.f32.xlu1 %v648_v51  ;;  %v657_v54 = vsel %vm137_vm1, %v4061_v49, 0.0  ;;  %3567 = vmatprep.subr.bf16.mxu1 %v3989_v39 }
 0x303   :  { %v3711_v55 = vpop.eup %3710  ;;  %658 = vadd.xlane.f32.xlu0 %v657_v54  ;;  %v4069_v56 = vmul.f32 %v3709_v53, %v4020_v6 }
 0x304   :  { %v4072_v58 = vmul.f32 %v3711_v55, %v4015_v1 }
 0x305   :  { %v651_v59 = vsel %vm137_vm1, %v4069_v56, 0.0 }
 0x306   :  { %v3713_v60 = vpop.eup %3712  ;;  %v660_v61 = vsel %vm137_vm1, %v4072_v58, 0.0 }
 0x307   :  { %v3715_v62 = vpop.eup %3714  ;;  %652 = vadd.xlane.f32.xlu0 %v651_v59  ;;  %661 = vadd.xlane.f32.xlu1 %v660_v61  ;;  %v4079_v63 = vmul.f32 %v3713_v60, %v4020_v6  ;;  %v1059_v60 = vld [vmem:[#allocation2 + $0x80] sm:$0xf] }
 0x308   :  { %v4084_v3 = vmul.f32 %v3715_v62, %v4015_v1 }
 0x309   :  { %v663_v2 = vsel %vm137_vm1, %v4079_v63, 0.0 }
 0x30a   :  { %v3717_v4 = vpop.eup %3716  ;;  %v666_v5 = vsel %vm137_vm1, %v4084_v3, 0.0 }
 0x30b   :  { %664 = vadd.xlane.f32.xlu0 %v663_v2  ;;  %v4089_v7 = vmul.f32 %v3717_v4, %v4020_v6 }
 0x30d   :  { %v669_v8 = vsel %vm137_vm1, %v4089_v7, 0.0 }
 0x30f   :  { %667 = vadd.xlane.f32.xlu0 %v666_v5 }
 0x313   :  { %670 = vadd.xlane.f32.xlu0 %v669_v8 }
 0x318   :  { %3683 = vrot.lane.b32.xlu1 %v3987_v38, %s3881_s25 }
 0x329   :  { %3678 = vrot.lane.b32.xlu0 %v3987_v38, %s3882_s26 }
 0x38b   :  { %v656_v10 = vpop.xlane.xlu1 %655 }
 0x38c   :  { %vm674_vm15 = vcmp.gt.f32.partialorder %v656_v10, 0.0 }
 0x38d   :  { %v682_v11 = vsel %vm674_vm15, %v656_v10, 1.0 }
 0x38e   :  { %3718 = vrcp.f32 %v682_v11 }
 0x38f   :  { %v650_v12 = vpop.xlane.xlu1 %649 }
 0x390   :  { %v659_v13 = vpop.xlane.xlu0 %658  ;;  %vm672_vm6 = vcmp.gt.f32.partialorder %v650_v12, 0.0 }
 0x391   :  { %vm675_vm7 = vcmp.gt.f32.partialorder %v659_v13, 0.0  ;;  %v680_v15 = vsel %vm672_vm6, %v650_v12, 1.0 }
 0x392   :  { %v683_v16 = vsel %vm675_vm7, %v659_v13, 1.0  ;;  %3720 = vrcp.f32 %v680_v15  ;;  %v4134_v15 = vld [vmem:[%s4384_s4] sm:$0xff] }
 0x393   :  { %3722 = vrcp.f32 %v683_v16  ;;  %v4139_v16 = vld [vmem:[%s4384_s4 + $0x8] sm:$0xff]  ;;  %vm1400_vm14 = vcmp.gt.f32.partialorder %v4134_v15, 0.0 }
 0x394   :  { %v653_v18 = vpop.xlane.xlu0 %652  ;;  %v662_v19 = vpop.xlane.xlu1 %661  ;;  %vm1401_vm15 = vcmp.gt.f32.partialorder %v4139_v16, 0.0 }
 0x395   :  { %vm673_vm9 = vcmp.gt.f32.partialorder %v653_v18, 0.0  ;;  %vm676_vm10 = vcmp.gt.f32.partialorder %v662_v19, 0.0 }
 0x396   :  { %v681_v38 = vsel %vm673_vm9, %v653_v18, 1.0  ;;  %v684_v21 = vsel %vm676_vm10, %v662_v19, 1.0 }
 0x397   :  { %3724 = vrcp.f32 %v681_v38 }
 0x398   :  { %v3719_v24 = vpop.eup %3718  ;;  %v665_v25 = vpop.xlane.xlu0 %664  ;;  %3726 = vrcp.f32 %v684_v21 }
 0x399   :  { %v693_v26 = vmul.f32 %v3719_v24, %v4053_v34  ;;  %vm677_vm11 = vcmp.gt.f32.partialorder %v665_v25, 0.0  ;;  %v3684_v34 = vpop.permute.xlu1 %3683 }
 0x39a   :  { %v685_v30 = vsel %vm677_vm11, %v665_v25, 1.0  ;;  %v3686_v42 = vunpack.i.h.bf16 %v3684_v34  ;;  %v3685_v43 = vunpack.i.l.bf16 %v3684_v34 }
 0x39b   :  { %3379 = vmatprep.mubr.msk.f32.mxu1 %vm137_vm1, %v693_v26  ;;  %3728 = vrcp.f32 %v685_v30 }
 0x39c   :  { %v3721_v27 = vpop.eup %3720  ;;  %v668_v17 = vpop.xlane.xlu0 %667 }
 0x39d   :  { %v3723_v28 = vpop.eup %3722  ;;  %vm678_vm12 = vcmp.gt.f32.partialorder %v668_v17, 0.0  ;;  %v689_v29 = vmul.f32 %v3721_v27, %v4058_v47 }
 0x39e   :  { %v695_v20 = vmul.f32 %v3723_v28, %v4061_v49  ;;  %v686_v31 = vsel %vm678_vm12, %v668_v17, 1.0 }
 0x39f   :  { %3730 = vrcp.f32 %v686_v31 }
 0x3a0   :  { %v671_v32 = vpop.xlane.xlu0 %670  ;;  %3380 = vmatmul.mubr.msk.f32.vlgmr.msra.gmra.mrb[4].mxu1 %vm137_vm1, %v695_v20 }
 0x3a1   :  { %3569 = vmatpush3.bf16.msra.mxu1 %v3989_v39  ;;  %3386 = vmatprep.mubr.msk.f32.mxu1 %vm137_vm1, %v689_v29  ;;  %v3725_v35 = vpop.eup %3724  ;;  %vm679_vm13 = vcmp.gt.f32.partialorder %v671_v32, 0.0  ;;  %v3574_v39 = vpack.c.bf16 %v3686_v42, %v3685_v43 }
 0x3a2   :  { %v3727_v36 = vpop.eup %3726  ;;  %v687_v46 = vsel %vm679_vm13, %v671_v32, 1.0  ;;  %v691_v47 = vmul.f32 %v3725_v35, %v4069_v56 }
 0x3a3   :  { %v697_v51 = vmul.f32 %v3727_v36, %v4072_v58  ;;  %3732 = vrcp.f32 %v687_v46 }
 0x3a4   :  { %v3679_v37 = vpop.permute.xlu0 %3678 }
 0x3a5   :  { %v3681_v44 = vunpack.i.h.bf16 %v3679_v37  ;;  %v3680_v45 = vunpack.i.l.bf16 %v3679_v37  ;;  %v3729_v53 = vpop.eup %3728 }
 0x3a6   :  { %v699_v55 = vmul.f32 %v3729_v53, %v4079_v63 }
 0x3a7   :  { %v3570_v49 = vpack.c.bf16 %v3681_v44, %v3680_v45 }
 0x3a8   :  { %3387 = vmatmul.mubr.msk.f32.vlgmr.msra.gmra.mrb[4].mxu1 %vm137_vm1, %v691_v47 }
 0x3a9   :  { %3571 = vmatprep.subr.bf16.mxu1 %v3570_v49  ;;  %3393 = vmatprep.mubr.msk.f32.mxu1 %vm137_vm1, %v697_v51  ;;  %v3731_v54 = vpop.eup %3730 }
 0x3aa   :  { %3573 = vmatpush3.bf16.msra.mxu1 %v3570_v49  ;;  %v701_v59 = vmul.f32 %v3731_v54, %v4084_v3 }
 0x3ab   :  { %3575 = vmatprep.subr.bf16.mxu1 %v3574_v39 }
 0x3ad   :  { %v3733_v56 = vpop.eup %3732 }
 0x3ae   :  { %v703_v58 = vmul.f32 %v3733_v56, %v4089_v7 }
 0x3b0   :  { %3394 = vmatmul.mubr.msk.f32.vlgmr.msra.gmra.mrb[4].mxu1 %vm137_vm1, %v699_v55 }
 0x3b1   :  { %3577 = vmatpush3.bf16.msra.mxu1 %v3574_v39  ;;  %3400 = vmatprep.mubr.msk.f32.mxu1 %vm137_vm1, %v701_v59 }
 0x3b2   :  { %3584 = vmatprep.subr.bf16.mxu1 %v3878_v14 }
 0x3b8   :  { %3401 = vmatmul.mubr.msk.f32.vlgmr.msra.gmra.mrb[4].mxu1 %vm137_vm1, %v703_v58 }
 0x3b9   :  { %3423 = vmatprep.mubr.msk.f32.mxu1 %vm3877_vm0, %v3876_v0 }
 0x3ba   :  { %3587 = vmatpush3.bf16.xpose.msk.msra.mxu1 %vm3956_vm4, %v3960_v23 }
 0x3c1   :  { %3424 = vmatmul.mubr.msk.f32.vlgmr.msra.gmra.mrb[6].mxu1 %vm229_vm3, %v1059_v60 }
 0x3c4   :  { %v1202_v61 = vpop.f32.mrb[8].mxu0 }
 0x3c5   :  { %v3418_v62 = vpop.f32.mrb[9].mxu0  ;;  %v1286_v23 = vrot.slane %v1202_v61, %v4005_v57 }
 0x3c7   :  { %v1287_v8 = vcombine.high %v1286_v23, %v1286_v23  ;;  %v1294_v9 = vrot.slane %v1286_v23, %v4005_v57 }
 0x3c9   :  { %v1301_v10 = vrot.slane %v1287_v8, %v4005_v57  ;;  %v1351_v12 = vrot.slane %v1294_v9, %v3991_v40  ;;  %v1302_v13 = vcombine.high %v1294_v9, %v1294_v9 }
 0x3cb   :  { %v1355_v11 = vrot.slane %v1301_v10, %v3991_v40  ;;  %v1359_v24 = vrot.slane %v1302_v13, %v3991_v40  ;;  %v1303_v25 = vcombine.high %v1301_v10, %v1301_v10 }
 0x3cd   :  { %v1363_v32 = vrot.slane %v1303_v25, %v3991_v40 }
 0x494   :  { %v1275_v63 = vpop.f32.mrb[6].mxu1 }
 0x495   :  { %v3425_v2 = vpop.f32.mrb[7].mxu1  ;;  %v1318_v3 = vrot.slane %v1275_v63, %v3993_v41  ;;  %v1307_v4 = vrot.slane %v1275_v63, %v3991_v40  ;;  %v1329_v5 = vrot.slane %v1275_v63, %v3997_v48  ;;  %v1340_v7 = vrot.slane %v1275_v63, %v4000_v50 }
 0x497   :  { %1320 = vbcast.lane.b32.xlu1 %v1318_v3, 256  ;;  %1313 = vbcast.lane.b32.xlu0 %v1307_v4, 264 }
 0x49b   :  { %1324 = vbcast.lane.b32.xlu1 %v1318_v3, 264  ;;  %1335 = vbcast.lane.b32.xlu0 %v1329_v5, 264 }
 0x49f   :  { %1346 = vbcast.lane.b32.xlu0 %v1340_v7, 264  ;;  %1309 = vbcast.lane.b32.xlu1 %v1307_v4, 256 }
 0x4a3   :  { %1331 = vbcast.lane.b32.xlu1 %v1329_v5, 256 }
 0x4a7   :  { %1342 = vbcast.lane.b32.xlu1 %v1340_v7, 256 }
 0x509   :  { %v1321_v18 = vpop.permute.xlu1 %1320  ;;  %v1314_v19 = vpop.permute.xlu0 %1313 }
 0x50a   :  { %v1370_v38 = vadd.f32 %v1355_v11, %v1321_v18  ;;  %v1369_v21 = vadd.f32 %v1351_v12, %v1314_v19 }
 0x50c   :  { %v1386_v26 = vmul.f32 0.2, %v1370_v38  ;;  %v1385_v27 = vmul.f32 0.2, %v1369_v21  ;;  %vm1378_vm6 = vcmp.gt.f32.partialorder %v1370_v38, 0.0  ;;  %vm1377_vm7 = vcmp.gt.f32.partialorder %v1369_v21, 0.0 }
 0x50d   :  { %v1325_v17 = vpop.permute.xlu1 %1324  ;;  %v1336_v28 = vpop.permute.xlu0 %1335 }
 0x50e   :  { %v1371_v29 = vadd.f32 %v1355_v11, %v1325_v17  ;;  %v1373_v30 = vadd.f32 %v1359_v24, %v1336_v28  ;;  %v1394_v20 = vsel %vm1378_vm6, %v1370_v38, %v1386_v26  ;;  %v1393_v31 = vsel %vm1377_vm7, %v1369_v21, %v1385_v27 }
 0x50f   :  { %v1408_v34 = vsel %vm1400_vm14, %v1394_v20, -1e+30  ;;  %v1407_v35 = vsel %vm1401_vm15, %v1393_v31, -1e+30 }
 0x510   :  { %v1387_v36 = vmul.f32 0.2, %v1371_v29  ;;  %v1389_v37 = vmul.f32 0.2, %v1373_v30  ;;  %v1420_v42 = vsel %vm54_vm2, %v1408_v34, -inf  ;;  %vm1379_vm9 = vcmp.gt.f32.partialorder %v1371_v29, 0.0 }
 0x511   :  { %v1347_v43 = vpop.permute.xlu0 %1346  ;;  %v1310_v44 = vpop.permute.xlu1 %1309  ;;  %1421 = vmax.xlane.f32.xlu1 %v1420_v42  ;;  %vm1381_vm10 = vcmp.gt.f32.partialorder %v1373_v30, 0.0  ;;  %v1417_v39 = vsel %vm54_vm2, %v1407_v35, -inf }
 0x512   :  { %v1375_v45 = vadd.f32 %v1363_v32, %v1347_v43  ;;  %v1368_v46 = vadd.f32 %v1351_v12, %v1310_v44  ;;  %v1395_v47 = vsel %vm1379_vm9, %v1371_v29, %v1387_v36  ;;  %v1397_v49 = vsel %vm1381_vm10, %v1373_v30, %v1389_v37 }
 0x513   :  { %v1409_v51 = vsel %vm1401_vm15, %v1395_v47, -1e+30  ;;  %v1411_v56 = vsel %vm1401_vm15, %v1397_v49, -1e+30 }
 0x514   :  { %v1391_v53 = vmul.f32 0.2, %v1375_v45  ;;  %v1384_v54 = vmul.f32 0.2, %v1368_v46  ;;  %v1423_v55 = vsel %vm54_vm2, %v1409_v51, -inf  ;;  %vm1376_vm11 = vcmp.gt.f32.partialorder %v1368_v46, 0.0 }
 0x515   :  { %v1332_v59 = vpop.permute.xlu1 %1331  ;;  %1424 = vmax.xlane.f32.xlu0 %v1423_v55  ;;  %1418 = vmax.xlane.f32.xlu1 %v1417_v39  ;;  %vm1383_vm12 = vcmp.gt.f32.partialorder %v1375_v45, 0.0  ;;  %v1429_v3 = vsel %vm54_vm2, %v1411_v56, -inf }
 0x516   :  { %v1372_v58 = vadd.f32 %v1359_v24, %v1332_v59  ;;  %v1392_v60 = vsel %vm1376_vm11, %v1368_v46, %v1384_v54  ;;  %v1399_v61 = vsel %vm1383_vm12, %v1375_v45, %v1391_v53 }
 0x517   :  { %v1406_v62 = vsel %vm1400_vm14, %v1392_v60, -1e+30  ;;  %v4162_v5 = vsel %vm1401_vm15, %v1399_v61, -1e+30 }
 0x518   :  { %v1388_v63 = vmul.f32 0.2, %v1372_v58  ;;  %v1414_v2 = vsel %vm54_vm2, %v1406_v62, -inf  ;;  %vm1380_vm13 = vcmp.gt.f32.partialorder %v1372_v58, 0.0  ;;  %v1435_v11 = vsel %vm54_vm2, %v4162_v5, -inf }
 0x519   :  { %v1343_v4 = vpop.permute.xlu1 %1342  ;;  %1415 = vmax.xlane.f32.xlu0 %v1414_v2  ;;  %1430 = vmax.xlane.f32.xlu1 %v1429_v3 }
 0x51a   :  { %v1374_v7 = vadd.f32 %v1363_v32, %v1343_v4  ;;  %v1396_v23 = vsel %vm1380_vm13, %v1372_v58, %v1388_v63 }
 0x51b   :  { %v1410_v8 = vsel %vm1400_vm14, %v1396_v23, -1e+30 }
 0x51c   :  { %v1390_v9 = vmul.f32 0.2, %v1374_v7  ;;  %v1426_v10 = vsel %vm54_vm2, %v1410_v8, -inf  ;;  %vm1382_vm6 = vcmp.gt.f32.partialorder %v1374_v7, 0.0 }
 0x51d   :  { %1427 = vmax.xlane.f32.xlu0 %v1426_v10  ;;  %1436 = vmax.xlane.f32.xlu1 %v1435_v11 }
 0x51e   :  { %v1398_v12 = vsel %vm1382_vm6, %v1374_v7, %v1390_v9 }
 0x51f   :  { %v1412_v13 = vsel %vm1400_vm14, %v1398_v12, -1e+30 }
 0x520   :  { %v1432_v18 = vsel %vm54_vm2, %v1412_v13, -inf }
 0x521   :  { %1433 = vmax.xlane.f32.xlu0 %v1432_v18 }
 0x59e   :  { %v1422_v19 = vpop.xlane.xlu1 %1421 }
 0x59f   :  { %v1440_v38 = vsub.f32 %v1408_v34, %v1422_v19 }
 0x5a1   :  { %v1450_v21 = vmul.f32 1.442695, %v1440_v38 }
 0x5a2   :  { %v1425_v24 = vpop.xlane.xlu0 %1424  ;;  %v1419_v25 = vpop.xlane.xlu1 %1418 }
 0x5a3   :  { %3734 = vpow2.f32 %v1450_v21  ;;  %v1441_v26 = vsub.f32 %v1409_v51, %v1425_v24  ;;  %v1439_v27 = vsub.f32 %v1407_v35, %v1419_v25 }
 0x5a5   :  { %v1452_v17 = vmul.f32 1.442695, %v1441_v26  ;;  %v1448_v28 = vmul.f32 1.442695, %v1439_v27 }
 0x5a6   :  { %v1416_v29 = vpop.xlane.xlu0 %1415  ;;  %v1431_v30 = vpop.xlane.xlu1 %1430 }
 0x5a7   :  { %3736 = vpow2.f32 %v1452_v17  ;;  %v1438_v20 = vsub.f32 %v1406_v62, %v1416_v29  ;;  %v1443_v31 = vsub.f32 %v1411_v56, %v1431_v30 }
 0x5a8   :  { %3738 = vpow2.f32 %v1448_v28 }
 0x5a9   :  { %v1446_v32 = vmul.f32 1.442695, %v1438_v20  ;;  %v1456_v36 = vmul.f32 1.442695, %v1443_v31 }
 0x5aa   :  { %v1428_v37 = vpop.xlane.xlu0 %1427 }
 0x5ab   :  { %3740 = vpow2.f32 %v1446_v32  ;;  %v1442_v42 = vsub.f32 %v1410_v8, %v1428_v37  ;;  %v1437_v8 = vpop.xlane.xlu1 %1436 }
 0x5ac   :  { %3742 = vpow2.f32 %v1456_v36  ;;  %v1445_v9 = vsub.f32 %v4162_v5, %v1437_v8 }
 0x5ad   :  { %v3735_v34 = vpop.eup %3734  ;;  %v1454_v43 = vmul.f32 1.442695, %v1442_v42 }
 0x5ae   :  { %v1434_v44 = vpop.xlane.xlu0 %1433  ;;  %v1464_v45 = vmul.f32 %v3735_v34, %v4134_v15  ;;  %v1460_v10 = vmul.f32 1.442695, %v1445_v9 }
 0x5af   :  { %3744 = vpow2.f32 %v1454_v43  ;;  %v1444_v35 = vsub.f32 %v1412_v13, %v1434_v44 }
 0x5b0   :  { %v1476_v46 = vsel %vm54_vm2, %v1464_v45, 0.0 }
 0x5b1   :  { %v3737_v47 = vpop.eup %3736  ;;  %v1458_v49 = vmul.f32 1.442695, %v1444_v35  ;;  %1477 = vadd.xlane.f32.xlu0 %v1476_v46 }
 0x5b2   :  { %v3739_v51 = vpop.eup %3738  ;;  %v4175_v39 = vmul.f32 %v3737_v47, %v4139_v16 }
 0x5b3   :  { %3746 = vpow2.f32 %v1458_v49  ;;  %v4180_v54 = vmul.f32 %v3739_v51, %v4139_v16 }
 0x5b4   :  { %v1479_v53 = vsel %vm54_vm2, %v4175_v39, 0.0  ;;  %3748 = vpow2.f32 %v1460_v10  ;;  %v3204_v10 = vld [vmem:[#allocation2 + $0x98] ss:$0 sm:$0xff] }
 0x5b5   :  { %v3741_v55 = vpop.eup %3740  ;;  %1480 = vadd.xlane.f32.xlu1 %v1479_v53  ;;  %v1473_v58 = vsel %vm54_vm2, %v4180_v54, 0.0 }
 0x5b6   :  { %v3743_v59 = vpop.eup %3742  ;;  %v4183_v56 = vmul.f32 %v3741_v55, %v4134_v15 }
 0x5b7   :  { %v4190_v61 = vmul.f32 %v3743_v59, %v4139_v16  ;;  %v1875_v59 = vld [vmem:[#allocation2 + $0x90] sm:$0xff] }
 0x5b8   :  { %v1470_v60 = vsel %vm54_vm2, %v4183_v56, 0.0  ;;  %3446 = vmatprep.subr.mxu0 %v1875_v59 }
 0x5b9   :  { %v3745_v62 = vpop.eup %3744  ;;  %1474 = vadd.xlane.f32.xlu1 %v1473_v58  ;;  %1471 = vadd.xlane.f32.xlu0 %v1470_v60  ;;  %v1485_v2 = vsel %vm54_vm2, %v4190_v61, 0.0  ;;  %v1963_v58 = vld [vmem:[#allocation2 + $0xa8] sm:$0xff] }
 0x5ba   :  { %v4193_v63 = vmul.f32 %v3745_v62, %v4134_v15  ;;  %3447 = vmatpush3.msra.mxu0 %v1875_v59 }
 0x5bc   :  { %v1482_v3 = vsel %vm54_vm2, %v4193_v63, 0.0 }
 0x5bd   :  { %v3747_v4 = vpop.eup %3746  ;;  %1486 = vadd.xlane.f32.xlu1 %v1485_v2  ;;  %1483 = vadd.xlane.f32.xlu0 %v1482_v3 }
 0x5be   :  { %v4200_v7 = vmul.f32 %v3747_v4, %v4134_v15  ;;  %v3749_v11 = vpop.eup %3748  ;;  %v1964_v4 = vld [vmem:[#allocation2 + $0xb0] sm:$0xff] }
 0x5bf   :  { %v4210_v12 = vmul.f32 %v3749_v11, %v4139_v16 }
 0x5c0   :  { %v1488_v23 = vsel %vm54_vm2, %v4200_v7, 0.0 }
 0x5c1   :  { %1489 = vadd.xlane.f32.xlu0 %v1488_v23  ;;  %v1491_v15 = vsel %vm54_vm2, %v4210_v12, 0.0 }
 0x5ce   :  { %1692 = vrot.lane.b32.xlu1 %v4003_v52, %s3882_s26 }
 0x5d7   :  { %1527 = vrot.lane.b32.xlu0 %v4003_v52, %s3880_s24 }
 0x5f2   :  { %1492 = vadd.xlane.f32.xlu1 %v1491_v15 }
 0x603   :  { %1778 = vrot.lane.b32.xlu1 %v4003_v52, %s3881_s25 }
 0x63e   :  { %v1478_v13 = vpop.xlane.xlu0 %1477 }
 0x63f   :  { %vm1496_vm14 = vcmp.gt.f32.partialorder %v1478_v13, 0.0 }
 0x640   :  { %v1504_v18 = vsel %vm1496_vm14, %v1478_v13, 1.0 }
 0x641   :  { %3750 = vrcp.f32 %v1504_v18 }
 0x642   :  { %v1481_v19 = vpop.xlane.xlu1 %1480 }
 0x643   :  { %vm1497_vm15 = vcmp.gt.f32.partialorder %v1481_v19, 0.0 }
 0x644   :  { %v1505_v5 = vsel %vm1497_vm15, %v1481_v19, 1.0  ;;  %v1966_v19 = vld [vmem:[#allocation2 + $0xc0] sm:$0xf] }
 0x645   :  { %3752 = vrcp.f32 %v1505_v5  ;;  %v1967_v5 = vld [vmem:[#allocation2 + $0xc8] sm:$0xf] }
 0x646   :  { %v1475_v38 = vpop.xlane.xlu1 %1474  ;;  %v1472_v21 = vpop.xlane.xlu0 %1471 }
 0x647   :  { %vm1494_vm7 = vcmp.gt.f32.partialorder %v1472_v21, 0.0  ;;  %vm1495_vm9 = vcmp.gt.f32.partialorder %v1475_v38, 0.0 }
 0x648   :  { %v1502_v16 = vsel %vm1494_vm7, %v1472_v21, 1.0  ;;  %v1503_v26 = vsel %vm1495_vm9, %v1475_v38, 1.0 }
 0x649   :  { %3754 = vrcp.f32 %v1502_v16 }
 0x64a   :  { %v1484_v24 = vpop.xlane.xlu0 %1483  ;;  %v1487_v28 = vpop.xlane.xlu1 %1486  ;;  %3756 = vrcp.f32 %v1503_v26 }
 0x64b   :  { %v3751_v25 = vpop.eup %3750  ;;  %vm1498_vm10 = vcmp.gt.f32.partialorder %v1484_v24, 0.0  ;;  %vm1499_vm11 = vcmp.gt.f32.partialorder %v1487_v28, 0.0 }
 0x64c   :  { %v1506_v27 = vsel %vm1498_vm10, %v1484_v24, 1.0  ;;  %v1515_v17 = vmul.f32 %v3751_v25, %v1464_v45  ;;  %v1507_v31 = vsel %vm1499_vm11, %v1487_v28, 1.0 }
 0x64d   :  { %3758 = vrcp.f32 %v1506_v27 }
 0x64e   :  { %3428 = vmatprep.mubr.msk.f32.mxu1 %vm54_vm2, %v1515_v17  ;;  %v1490_v29 = vpop.xlane.xlu0 %1489  ;;  %3760 = vrcp.f32 %v1507_v31  ;;  %v1693_v34 = vpop.permute.xlu1 %1692 }
 0x64f   :  { %v3753_v30 = vpop.eup %3752  ;;  %vm1500_vm12 = vcmp.gt.f32.partialorder %v1490_v29, 0.0 }
 0x650   :  { %v1517_v32 = vmul.f32 %v3753_v30, %v4175_v39  ;;  %v1508_v37 = vsel %vm1500_vm12, %v1490_v29, 1.0 }
 0x651   :  { %3762 = vrcp.f32 %v1508_v37 }
 0x652   :  { %v1528_v20 = vpop.permute.xlu0 %1527 }
 0x653   :  { %3426 = vmatprep.subr.mxu1 %v1528_v20  ;;  %v3755_v36 = vpop.eup %3754 }
 0x654   :  { %3427 = vmatpush3.msra.mxu1 %v1528_v20  ;;  %v1511_v42 = vmul.f32 %v3755_v36, %v4183_v56  ;;  %v3757_v43 = vpop.eup %3756  ;;  %v1962_v56 = vld [vmem:[#allocation2 + $0xa0] sm:$0xff] }
 0x655   :  { %3429 = vmatmul.mubr.msk.f32.vlgmr.msra.gmra.mrb[4].mxu1 %vm54_vm2, %v1517_v32  ;;  %3431 = vmatprep.subr.mxu1 %v4003_v52  ;;  %v1513_v45 = vmul.f32 %v3757_v43, %v4180_v54  ;;  %v3588_v60 = vpack.c.bf16 %v1963_v58, %v1962_v56 }
 0x656   :  { %3432 = vmatpush3.msra.mxu1 %v4003_v52  ;;  %3433 = vmatprep.mubr.msk.f32.mxu1 %vm54_vm2, %v1511_v42 }
 0x657   :  { %3436 = vmatprep.subr.mxu1 %v1693_v34  ;;  %v3759_v44 = vpop.eup %3758  ;;  %3589 = vmatprep.subr.bf16.mxu0 %v3588_v60 }
 0x658   :  { %v1519_v35 = vmul.f32 %v3759_v44, %v4193_v63  ;;  %v3761_v46 = vpop.eup %3760  ;;  %v3203_v63 = vld [vmem:[#allocation2 + $0x88] ss:$0 sm:$0xff] }
 0x659   :  { %v1521_v49 = vmul.f32 %v3761_v46, %v4190_v61 }
 0x65b   :  { %v3763_v47 = vpop.eup %3762 }
 0x65c   :  { %v1523_v52 = vmul.f32 %v3763_v47, %v4200_v7  ;;  %v1965_v7 = vld [vmem:[#allocation2 + $0xb8] sm:$0xff] }
 0x65d   :  { %3434 = vmatmul.mubr.msk.f32.vlgmr.msra.gmra.mrb[4].mxu1 %vm54_vm2, %v1513_v45  ;;  %v3592_v9 = vpack.c.bf16 %v1965_v7, %v1964_v4 }
 0x65e   :  { %3437 = vmatpush3.msra.mxu1 %v1693_v34  ;;  %3438 = vmatprep.mubr.msk.f32.mxu1 %vm54_vm2, %v1519_v35 }
 0x665   :  { %3439 = vmatmul.mubr.msk.f32.vlgmr.msra.gmra.mrb[4].mxu1 %vm54_vm2, %v1521_v49 }
 0x666   :  { %3443 = vmatprep.mubr.msk.f32.mxu1 %vm54_vm2, %v1523_v52 }
 0x67f   :  { %v1493_v51 = vpop.xlane.xlu1 %1492 }
 0x680   :  { %vm1501_vm13 = vcmp.gt.f32.partialorder %v1493_v51, 0.0 }
 0x681   :  { %v1509_v39 = vsel %vm1501_vm13, %v1493_v51, 1.0 }
 0x682   :  { %3764 = vrcp.f32 %v1509_v39 }
 0x683   :  { %v1779_v53 = vpop.permute.xlu1 %1778 }
 0x684   :  { %3441 = vmatprep.subr.mxu1 %v1779_v53 }
 0x685   :  { %3442 = vmatpush3.msra.mxu1 %v1779_v53 }
 0x68c   :  { %v3765_v54 = vpop.eup %3764 }
 0x68d   :  { %v1525_v55 = vmul.f32 %v3765_v54, %v4210_v12 }
 0x68f   :  { %3444 = vmatmul.mubr.msk.f32.vlgmr.msra.gmra.mrb[4].mxu1 %vm54_vm2, %v1525_v55 }
 0x762   :  { %v3445_v61 = vpop.f32.mrb[4].mxu1 }
 0x763   :  { %v1867_v62 = vmul.f32 0.25, %v3445_v61  ;;  %v1853_v2 = vpop.f32.mrb[5].mxu1 }
 0x764   :  { %v1866_v3 = vmul.f32 0.25, %v1853_v2 }
 0x765   :  { %v1874_v8 = vadd.f32 %v3203_v63, %v1867_v62 }
 0x766   :  { %v1873_v23 = vadd.f32 %v3203_v63, %v1866_v3 }
 0x768   :  { %3448 = vmatprep.mubr.msk.f32.mxu0 %vm54_vm2, %v1873_v23 }
 0x769   :  { %3449 = vmatmul.mubr.msk.f32.vlgmr.msra.gmra.mrb[10].mxu0 %vm54_vm2, %v1874_v8 }
 0x76a   :  { %3591 = vmatpush3.bf16.msra.mxu0 %v3588_v60 }
 0x76b   :  { %3593 = vmatprep.subr.bf16.mxu0 %v3592_v9 }
 0x76e   :  { %3595 = vmatpush3.bf16.msra.mxu0 %v3592_v9 }
 0x76f   :  { %3596 = vmatprep.subr.bf16.mxu0 %v3878_v14 }
 0x83c   :  { %v3450_v11 = vpop.f32.mrb[10].mxu0 }
 0x83d   :  { %v1959_v12 = vadd.f32 %v3450_v11, %v3204_v10  ;;  %v1953_v15 = vpop.f32.mrb[11].mxu0 }
 0x83e   :  { %v1954_v13 = vadd.f32 %v3204_v10, %v1953_v15 }
 0x840   :  { %v3597_v18 = vpack.c.bf16 %v1959_v12, %v1954_v13  ;;  %3459 = vmatprep.mubr.msk.f32.mxu0 %vm229_vm3, %v1954_v13 }
 0x841   :  { %3460 = vmatmul.mubr.msk.f32.vlgmr.msra.gmra.mrb[12].mxu0 %vm229_vm3, %v1959_v12 }
 0x842   :  { %3599 = vmatpush3.bf16.xpose.msk.msra.mxu0 %vm3956_vm4, %v3597_v18  ;;  %3466 = vmatprep.mubr.msk.f32.mxu0 %vm3877_vm0, %v3876_v0 }
 0x843   :  { %3600 = vmatprep.subr.bf16.mxu0 %v3878_v14 }
 0x849   :  { %3467 = vmatmul.mubr.msk.f32.vlgmr.msra.gmra.mrb[14].mxu0 %vm229_vm3, %v1966_v19 }
 0x84a   :  { %3603 = vmatpush3.bf16.xpose.msk.msra.mxu0 %vm3956_vm4, %v3597_v18  ;;  %3473 = vmatprep.mubr.msk.f32.mxu0 %vm3877_vm0, %v3876_v0 }
 0x851   :  { %3474 = vmatmul.mubr.msk.f32.vlgmr.msra.gmra.mrb[16].mxu0 %vm229_vm3, %v1967_v5 }
 0x914   :  { %v3461_v38 = vpop.f32.mrb[12].mxu0 }
 0x915   :  { %v2040_v21 = vpop.f32.mrb[13].mxu0 }
 0x916   :  { %v4249_v16 = vpack.i.bf16 %v3461_v38, %v2040_v21  ;;  %v4251_v24 = vpack.c.bf16 %v3461_v38, %v2040_v21 }
 0x91c   :  { %v2118_v25 = vpop.f32.mrb[14].mxu0 }
 0x91d   :  { %v3468_v26 = vpop.f32.mrb[15].mxu0  ;;  %v2202_v20 = vrot.slane %v2118_v25, %v4005_v57 }
 0x91f   :  { %v2203_v31 = vcombine.high %v2202_v20, %v2202_v20 }
 0x921   :  { %v2217_v32 = vrot.slane %v2203_v31, %v4005_v57 }
 0x923   :  { %v2271_v36 = vrot.slane %v2217_v32, %v3991_v40  ;;  %v2219_v54 = vcombine.high %v2217_v32, %v2217_v32 }
 0x924   :  { %v2191_v27 = vpop.f32.mrb[16].mxu0 }
 0x925   :  { %v3475_v17 = vpop.f32.mrb[17].mxu0  ;;  %v2234_v28 = vrot.slane %v2191_v27, %v3993_v41  ;;  %v2223_v22 = vrot.slane %v2191_v27, %v3991_v40  ;;  %v2245_v29 = vrot.slane %v2191_v27, %v3997_v48  ;;  %v2256_v30 = vrot.slane %v2191_v27, %v4000_v50 }
 0x926   :  { %v2210_v41 = vrot.slane %v2202_v20, %v4005_v57  ;;  %v2279_v8 = vrot.slane %v2219_v54, %v3991_v40 }
 0x927   :  { %2240 = vbcast.lane.b32.xlu1 %v2234_v28, 264  ;;  %2236 = vbcast.lane.b32.xlu0 %v2234_v28, 256 }
 0x928   :  { %v2267_v48 = vrot.slane %v2210_v41, %v3991_v40  ;;  %v2218_v44 = vcombine.high %v2210_v41, %v2210_v41 }
 0x92a   :  { %v2275_v39 = vrot.slane %v2218_v44, %v3991_v40 }
 0x92b   :  { %2229 = vbcast.lane.b32.xlu1 %v2223_v22, 264  ;;  %2225 = vbcast.lane.b32.xlu0 %v2223_v22, 256 }
 0x92f   :  { %2251 = vbcast.lane.b32.xlu1 %v2245_v29, 264  ;;  %2247 = vbcast.lane.b32.xlu0 %v2245_v29, 256 }
 0x933   :  { %2262 = vbcast.lane.b32.xlu1 %v2256_v30, 264  ;;  %2258 = vbcast.lane.b32.xlu0 %v2256_v30, 256 }
 0x999   :  { %v2241_v37 = vpop.permute.xlu1 %2240  ;;  %v2237_v42 = vpop.permute.xlu0 %2236 }
 0x99a   :  { %v2287_v34 = vadd.f32 %v2271_v36, %v2241_v37  ;;  %v2286_v43 = vadd.f32 %v2271_v36, %v2237_v42 }
 0x99c   :  { %v2303_v45 = vmul.f32 0.2, %v2287_v34  ;;  %v2302_v50 = vmul.f32 0.2, %v2286_v43  ;;  %vm2295_vm4 = vcmp.gt.f32.partialorder %v2287_v34, 0.0  ;;  %vm2294_vm6 = vcmp.gt.f32.partialorder %v2286_v43, 0.0 }
 0x99d   :  { %v2230_v35 = vpop.permute.xlu1 %2229  ;;  %v2226_v46 = vpop.permute.xlu0 %2225 }
 0x99e   :  { %v2285_v47 = vadd.f32 %v2267_v48, %v2230_v35  ;;  %v2284_v49 = vadd.f32 %v2267_v48, %v2226_v46  ;;  %v2311_v52 = vsel %vm2295_vm4, %v2287_v34, %v2303_v45  ;;  %v2310_v51 = vsel %vm2294_vm6, %v2286_v43, %v2302_v50 }
 0x99f   :  { %v2319_v57 = vsel %vm579_vm8, %v2311_v52, -1e+30  ;;  %v2318_v53 = vsel %vm578_vm5, %v2310_v51, -1e+30 }
 0x9a0   :  { %v2301_v55 = vmul.f32 0.2, %v2285_v47  ;;  %v2300_v59 = vmul.f32 0.2, %v2284_v49  ;;  %v2333_v56 = vsel %vm137_vm1, %v2319_v57, -inf  ;;  %v2330_v58 = vsel %vm137_vm1, %v2318_v53, -inf }
 0x9a1   :  { %2334 = vmax.xlane.f32.xlu1 %v2333_v56  ;;  %v2252_v60 = vpop.permute.xlu1 %2251  ;;  %2331 = vmax.xlane.f32.xlu0 %v2330_v58  ;;  %v2248_v61 = vpop.permute.xlu0 %2247  ;;  %vm2292_vm14 = vcmp.gt.f32.partialorder %v2284_v49, 0.0  ;;  %vm2293_vm15 = vcmp.gt.f32.partialorder %v2285_v47, 0.0 }
 0x9a2   :  { %v2289_v62 = vadd.f32 %v2275_v39, %v2252_v60  ;;  %v2288_v63 = vadd.f32 %v2275_v39, %v2248_v61  ;;  %v2308_v2 = vsel %vm2292_vm14, %v2284_v49, %v2300_v59  ;;  %v2309_v3 = vsel %vm2293_vm15, %v2285_v47, %v2301_v55  ;;  %v3799_v59 = vld [vmem:[%s4383_s3] sm:$0xff] }
 0x9a3   :  { %v2316_v4 = vsel %vm578_vm5, %v2308_v2, -1e+30  ;;  %v2317_v12 = vsel %vm579_vm8, %v2309_v3, -1e+30 }
 0x9a4   :  { %v2305_v7 = vmul.f32 0.2, %v2289_v62  ;;  %v2304_v23 = vmul.f32 0.2, %v2288_v63  ;;  %v2324_v9 = vsel %vm137_vm1, %v2316_v4, -inf  ;;  %vm2296_vm7 = vcmp.gt.f32.partialorder %v2288_v63, 0.0 }
 0x9a5   :  { %v2263_v10 = vpop.permute.xlu1 %2262  ;;  %2325 = vmax.xlane.f32.xlu0 %v2324_v9  ;;  %v2259_v11 = vpop.permute.xlu0 %2258  ;;  %vm2297_vm9 = vcmp.gt.f32.partialorder %v2289_v62, 0.0  ;;  %v2327_v40 = vsel %vm137_vm1, %v2317_v12, -inf }
 0x9a6   :  { %v2291_v15 = vadd.f32 %v2279_v8, %v2263_v10  ;;  %v2290_v13 = vadd.f32 %v2279_v8, %v2259_v11  ;;  %v2312_v18 = vsel %vm2296_vm7, %v2288_v63, %v2304_v23  ;;  %v2313_v19 = vsel %vm2297_vm9, %v2289_v62, %v2305_v7 }
 0x9a7   :  { %v2320_v5 = vsel %vm578_vm5, %v2312_v18, -1e+30  ;;  %v4281_v26 = vsel %vm579_vm8, %v2313_v19, -1e+30 }
 0x9a8   :  { %v2307_v38 = vmul.f32 0.2, %v2291_v15  ;;  %v2306_v21 = vmul.f32 0.2, %v2290_v13  ;;  %v2336_v25 = vsel %vm137_vm1, %v2320_v5, -inf  ;;  %vm2298_vm10 = vcmp.gt.f32.partialorder %v2290_v13, 0.0 }
 0x9a9   :  { %2328 = vmax.xlane.f32.xlu0 %v2327_v40  ;;  %2337 = vmax.xlane.f32.xlu1 %v2336_v25  ;;  %vm2299_vm11 = vcmp.gt.f32.partialorder %v2291_v15, 0.0  ;;  %v2339_v22 = vsel %vm137_vm1, %v4281_v26, -inf }
 0x9aa   :  { %v2314_v27 = vsel %vm2298_vm10, %v2290_v13, %v2306_v21  ;;  %v2315_v17 = vsel %vm2299_vm11, %v2291_v15, %v2307_v38 }
 0x9ab   :  { %v2322_v28 = vsel %vm578_vm5, %v2314_v27, -1e+30  ;;  %v2323_v30 = vsel %vm579_vm8, %v2315_v17, -1e+30 }
 0x9ac   :  { %v2342_v29 = vsel %vm137_vm1, %v2322_v28, -inf  ;;  %v2345_v20 = vsel %vm137_vm1, %v2323_v30, -inf }
 0x9ad   :  { %2340 = vmax.xlane.f32.xlu0 %v2339_v22  ;;  %2343 = vmax.xlane.f32.xlu1 %v2342_v29 }
 0x9b1   :  { %2346 = vmax.xlane.f32.xlu0 %v2345_v20 }
 0xa2e   :  { %v2335_v31 = vpop.xlane.xlu1 %2334  ;;  %v2332_v32 = vpop.xlane.xlu0 %2331 }
 0xa2f   :  { %v2351_v41 = vsub.f32 %v2319_v57, %v2335_v31  ;;  %v2350_v36 = vsub.f32 %v2318_v53, %v2332_v32  ;;  %v3798_v53 = vld [vmem:[%s4383_s3 + $0x8] sm:$0xff]  ;;  %s3883_s3 = smov [#allocation7]  }
 0xa30   :  { %s3158_s9 = sshll.u32 %s3883_s3, 4  ;;  %s3159_s9 = int_to_ptr.vmem [resolvable:$true] %s3158_s9 }
 0xa31   :  { %v2362_v37 = vmul.f32 1.442695, %v2351_v41  ;;  %v2360_v1 = vmul.f32 1.442695, %v2350_v36  ;;  %s3844_s10 = scalar_lea.vmem %s3159_s9, 16  ;;  %s3848_s11 = scalar_lea.vmem %s3159_s9, 32 }
 0xa32   :  { %v2326_v42 = vpop.xlane.xlu0 %2325  ;;  %p3845_p2 = scmp.ne.s32.totalorder %s3159_s9, %s3844_s10  ;;  %p3849_p3 = scmp.lt.s32.totalorder %s3159_s9, %s3159_s9 }
 0xa33   :  { %3766 = vpow2.f32 %v2362_v37  ;;  %v2348_v34 = vsub.f32 %v2316_v4, %v2326_v42  ;;  %p3850_p4 = scmp.lt.s32.totalorder %s3848_s11, %s3844_s10 }
 0xa34   :  { %3768 = vpow2.f32 %v2360_v1 }
 0xa35   :  { %v2356_v43 = vmul.f32 1.442695, %v2348_v34  ;;  %p3851_p5 = por %p3850_p4, %p3849_p3 }
 0xa36   :  { %v2338_v48 = vpop.xlane.xlu1 %2337  ;;  %v2329_v44 = vpop.xlane.xlu0 %2328 }
 0xa37   :  { %3770 = vpow2.f32 %v2356_v43  ;;  %v2352_v45 = vsub.f32 %v2320_v5, %v2338_v48  ;;  %v2349_v6 = vsub.f32 %v2317_v12, %v2329_v44  ;;  %p3852_p6 = pnand %p3851_p5, %p3845_p2 }
 0xa39   :  { %v2364_v50 = vmul.f32 1.442695, %v2352_v45  ;;  %v2358_v35 = vmul.f32 1.442695, %v2349_v6 }
 0xa3a   :  { %v2344_v46 = vpop.xlane.xlu1 %2343  ;;  %v2341_v47 = vpop.xlane.xlu0 %2340 }
 0xa3b   :  { %3772 = vpow2.f32 %v2364_v50  ;;  %v2354_v49 = vsub.f32 %v2322_v28, %v2344_v46  ;;  %v2353_v19 = vsub.f32 %v4281_v26, %v2341_v47 }
 0xa3c   :  { %3774 = vpow2.f32 %v2358_v35 }
 0xa3d   :  { %v3767_v52 = vpop.eup %3766  ;;  %v2368_v51 = vmul.f32 1.442695, %v2354_v49  ;;  %v2366_v5 = vmul.f32 1.442695, %v2353_v19  ;;  %v2885_v19 = vld [vmem:[#allocation2 + $0x100] sm:$0xff] }
 0xa3e   :  { %v3769_v57 = vpop.eup %3768  ;;  %v2347_v39 = vpop.xlane.xlu0 %2346  ;;  %v4294_v54 = vmul.f32 %v3798_v53, %v3767_v52 }
 0xa3f   :  { %3776 = vpow2.f32 %v2368_v51  ;;  %v2355_v55 = vsub.f32 %v2323_v30, %v2347_v39  ;;  %v2374_v56 = vmul.f32 %v3799_v59, %v3769_v57 }
 0xa40   :  { %v2389_v58 = vsel %vm137_vm1, %v4294_v54, 0.0 }
 0xa41   :  { %v3771_v60 = vpop.eup %3770  ;;  %v2370_v61 = vmul.f32 1.442695, %v2355_v55  ;;  %2390 = vadd.xlane.f32.xlu0 %v2389_v58  ;;  %v2386_v62 = vsel %vm137_vm1, %v2374_v56, 0.0 }
 0xa42   :  { %2387 = vadd.xlane.f32.xlu1 %v2386_v62  ;;  %v4302_v63 = vmul.f32 %v3799_v59, %v3771_v60 }
 0xa43   :  { %3778 = vpow2.f32 %v2370_v61 }
 0xa44   :  { %v2380_v2 = vsel %vm137_vm1, %v4302_v63, 0.0  ;;  %3780 = vpow2.f32 %v2366_v5 }
 0xa45   :  { %v3773_v3 = vpop.eup %3772 }
 0xa46   :  { %v3775_v4 = vpop.eup %3774  ;;  %2381 = vadd.xlane.f32.xlu1 %v2380_v2  ;;  %v4306_v7 = vmul.f32 %v3799_v59, %v3773_v3  ;;  %v2795_v3 = vld [vmem:[#allocation2 + $0xd8] sm:$0xff] }
 0xa47   :  { %v4308_v23 = vmul.f32 %v3798_v53, %v3775_v4  ;;  %3504 = vmatprep.subr.mxu0 %v2795_v3  ;;  %v2882_v4 = vld [vmem:[#allocation2 + $0xe8] sm:$0xff] }
 0xa48   :  { %v2392_v8 = vsel %vm137_vm1, %v4306_v7, 0.0  ;;  %3505 = vmatpush3.msra.mxu0 %v2795_v3 }
 0xa49   :  { %v3777_v9 = vpop.eup %3776  ;;  %v2383_v10 = vsel %vm137_vm1, %v4308_v23, 0.0 }
 0xa4a   :  { %2393 = vadd.xlane.f32.xlu1 %v2392_v8  ;;  %2384 = vadd.xlane.f32.xlu0 %v2383_v10  ;;  %v4314_v11 = vmul.f32 %v3799_v59, %v3777_v9  ;;  %v3223_v10 = vld [vmem:[#allocation2 + $0xd0] ss:$0 sm:$0xff] }
 0xa4c   :  { %v2398_v12 = vsel %vm137_vm1, %v4314_v11, 0.0 }
 0xa4d   :  { %v3779_v15 = vpop.eup %3778 }
 0xa4e   :  { %2399 = vadd.xlane.f32.xlu1 %v2398_v12  ;;  %v4318_v13 = vmul.f32 %v3798_v53, %v3779_v15  ;;  %v3781_v38 = vpop.eup %3780 }
 0xa4f   :  { %v4327_v21 = vmul.f32 %v3798_v53, %v3781_v38  ;;  %v2974_v38 = vsel %vm229_vm3, %v3978_v33, 0.0 }
 0xa50   :  { %v2401_v18 = vsel %vm137_vm1, %v4318_v13, 0.0 }
 0xa51   :  { %v2395_v40 = vsel %vm137_vm1, %v4327_v21, 0.0 }
 0xa52   :  { %2402 = vadd.xlane.f32.xlu1 %v2401_v18 }
 0xa60   :  { %3688 = vrot.lane.b32.xlu0 %v4249_v16, %s3880_s24 }
 0xa63   :  { %3693 = vrot.lane.b32.xlu1 %v4249_v16, %s3882_s26 }
 0xa7f   :  { %2396 = vadd.xlane.f32.xlu0 %v2395_v40 }
 0xa95   :  { %3698 = vrot.lane.b32.xlu0 %v4249_v16, %s3881_s25 }
 0xace   :  { %v2391_v25 = vpop.xlane.xlu0 %2390 }
 0xacf   :  { %v2388_v27 = vpop.xlane.xlu1 %2387  ;;  %vm2407_vm5 = vcmp.gt.f32.partialorder %v2391_v25, 0.0 }
 0xad0   :  { %vm2406_vm8 = vcmp.gt.f32.partialorder %v2388_v27, 0.0  ;;  %v2415_v28 = vsel %vm2407_vm5, %v2391_v25, 1.0 }
 0xad1   :  { %v2414_v17 = vsel %vm2406_vm8, %v2388_v27, 1.0 }
 0xad2   :  { %3782 = vrcp.f32 %v2414_v17  ;;  %v3224_v17 = vld [vmem:[#allocation2 + $0xe0] ss:$0 sm:$0xff] }
 0xad3   :  { %v2382_v26 = vpop.xlane.xlu1 %2381  ;;  %3784 = vrcp.f32 %v2415_v28  ;;  %v2994_v28 = vld [vmem:[#allocation2 + $0x110] sm:$0xff] }
 0xad4   :  { %vm2404_vm12 = vcmp.gt.f32.partialorder %v2382_v26, 0.0 }
 0xad5   :  { %v2412_v22 = vsel %vm2404_vm12, %v2382_v26, 1.0  ;;  %v2995_v26 = vld [vmem:[#allocation2 + $0x118] sm:$0xff] }
 0xad6   :  { %3786 = vrcp.f32 %v2412_v22 }
 0xad7   :  { %v2394_v29 = vpop.xlane.xlu1 %2393  ;;  %v2385_v30 = vpop.xlane.xlu0 %2384 }
 0xad8   :  { %vm2408_vm13 = vcmp.gt.f32.partialorder %v2394_v29, 0.0  ;;  %vm2405_vm4 = vcmp.gt.f32.partialorder %v2385_v30, 0.0 }
 0xad9   :  { %v2413_v20 = vsel %vm2405_vm4, %v2385_v30, 1.0  ;;  %v2416_v31 = vsel %vm2408_vm13, %v2394_v29, 1.0 }
 0xada   :  { %3788 = vrcp.f32 %v2413_v20  ;;  %v3635_v20 = vpack.c.bf16 %v2995_v26, %v2994_v28 }
 0xadb   :  { %v2400_v32 = vpop.xlane.xlu1 %2399  ;;  %v3689_v16 = vpop.permute.xlu0 %3688  ;;  %3790 = vrcp.f32 %v2416_v31 }
 0xadc   :  { %v3783_v41 = vpop.eup %3782  ;;  %v3691_v36 = vunpack.i.h.bf16 %v3689_v16  ;;  %v3690_v37 = vunpack.i.l.bf16 %v3689_v16  ;;  %vm2410_vm6 = vcmp.gt.f32.partialorder %v2400_v32, 0.0  ;;  %v2996_v16 = vld [vmem:[#allocation2 + $0x120] sm:$0xff] }
 0xadd   :  { %v2425_v1 = vmul.f32 %v3783_v41, %v2374_v56  ;;  %v3785_v34 = vpop.eup %3784  ;;  %v2418_v57 = vsel %vm2410_vm6, %v2400_v32, 1.0  ;;  %v2997_v41 = vld [vmem:[#allocation2 + $0x128] sm:$0xff] }
 0xade   :  { %v3604_v42 = vpack.c.bf16 %v3691_v36, %v3690_v37  ;;  %v2427_v44 = vmul.f32 %v3785_v34, %v4294_v54  ;;  %3792 = vrcp.f32 %v2418_v57  ;;  %v3638_v33 = vpack.c.bf16 %v2997_v41, %v2996_v16 }
 0xadf   :  { %3480 = vmatprep.mubr.msk.f32.mxu1 %vm137_vm1, %v2425_v1  ;;  %v2403_v43 = vpop.xlane.xlu1 %2402  ;;  %v2998_v1 = vld [vmem:[#allocation2 + $0x130] sm:$0xff] }
 0xae0   :  { %v3787_v48 = vpop.eup %3786  ;;  %3605 = vmatprep.subr.bf16.mxu1 %v3604_v42  ;;  %vm2411_vm15 = vcmp.gt.f32.partialorder %v2403_v43, 0.0 }
 0xae1   :  { %3607 = vmatpush3.bf16.msra.mxu1 %v3604_v42  ;;  %v2421_v6 = vmul.f32 %v3787_v48, %v4302_v63  ;;  %v2419_v59 = vsel %vm2411_vm15, %v2403_v43, 1.0  ;;  %v2999_v42 = vld [vmem:[#allocation2 + $0x138] sm:$0xff]  ;;  %v3000_v43 = vld [vmem:[#allocation2 + $0x140] sm:$0xff]  ;;  %v3001_v48 = vld [vmem:[#allocation2 + $0x148] sm:$0xff] }
 0xae2   :  { %3609 = vmatprep.subr.bf16.mxu1 %v4251_v24  ;;  %v3629_v34 = vpack.c.bf16 %v2999_v42, %v2998_v1 }
 0xae3   :  { %v3694_v45 = vpop.permute.xlu1 %3693 }
 0xae4   :  { %v3696_v50 = vunpack.i.h.bf16 %v3694_v45  ;;  %v3695_v35 = vunpack.i.l.bf16 %v3694_v45  ;;  %3481 = vmatmul.mubr.msk.f32.vlgmr.msra.gmra.mrb[8].mxu1 %vm137_vm1, %v2427_v44  ;;  %v3789_v47 = vpop.eup %3788  ;;  %v3632_v44 = vpack.c.bf16 %v3001_v48, %v3000_v43  ;;  %v3227_v45 = vld [vmem:[#allocation2 + $0x108] ss:$0 sm:$0xff] }
 0xae5   :  { %3611 = vmatpush3.bf16.msra.mxu1 %v4251_v24  ;;  %3487 = vmatprep.mubr.msk.f32.mxu1 %vm137_vm1, %v2421_v6  ;;  %v3791_v49 = vpop.eup %3790  ;;  %v2423_v52 = vmul.f32 %v3789_v47, %v4308_v23 }
 0xae6   :  { %v3612_v46 = vpack.c.bf16 %v3696_v50, %v3695_v35  ;;  %v2429_v51 = vmul.f32 %v3791_v49, %v4306_v7  ;;  %v2883_v7 = vld [vmem:[#allocation2 + $0xf0] sm:$0xff] }
 0xae7   :  { %v3620_v23 = vpack.c.bf16 %v2883_v7, %v2882_v4 }
 0xae8   :  { %3613 = vmatprep.subr.bf16.mxu1 %v3612_v46  ;;  %v3793_v58 = vpop.eup %3792 }
 0xae9   :  { %v2433_v62 = vmul.f32 %v3793_v58, %v4314_v11  ;;  %3621 = vmatprep.subr.bf16.mxu0 %v3620_v23 }
 0xaec   :  { %3488 = vmatmul.mubr.msk.f32.vlgmr.msra.gmra.mrb[8].mxu1 %vm137_vm1, %v2423_v52 }
 0xaed   :  { %3615 = vmatpush3.bf16.msra.mxu1 %v3612_v46  ;;  %3494 = vmatprep.mubr.msk.f32.mxu1 %vm137_vm1, %v2429_v51 }
 0xb0c   :  { %v2397_v39 = vpop.xlane.xlu0 %2396 }
 0xb0d   :  { %vm2409_vm14 = vcmp.gt.f32.partialorder %v2397_v39, 0.0 }
 0xb0e   :  { %v2417_v24 = vsel %vm2409_vm14, %v2397_v39, 1.0 }
 0xb0f   :  { %3794 = vrcp.f32 %v2417_v24 }
 0xb10   :  { %v3699_v53 = vpop.permute.xlu0 %3698  ;;  %3796 = vrcp.f32 %v2419_v59 }
 0xb11   :  { %v3701_v54 = vunpack.i.h.bf16 %v3699_v53  ;;  %v3700_v55 = vunpack.i.l.bf16 %v3699_v53 }
 0xb13   :  { %v3616_v56 = vpack.c.bf16 %v3701_v54, %v3700_v55 }
 0xb15   :  { %3617 = vmatprep.subr.bf16.mxu1 %v3616_v56 }
 0xb19   :  { %v3795_v60 = vpop.eup %3794 }
 0xb1a   :  { %v2431_v61 = vmul.f32 %v3795_v60, %v4327_v21  ;;  %v3797_v63 = vpop.eup %3796  ;;  %v2975_v21 = vrot.slane %v2974_v38, 4  ;;  %v3148_v60 = vld [vmem:[#allocation2 + $0x150] sm:$0x1] }
 0xb1b   :  { %v2435_v2 = vmul.f32 %v3797_v63, %v4318_v13  ;;  %v2884_v13 = vld [vmem:[#allocation2 + $0xf8] sm:$0xff] }
 0xb1c   :  { %3495 = vmatmul.mubr.msk.f32.vlgmr.msra.gmra.mrb[8].mxu1 %vm137_vm1, %v2431_v61  ;;  %v3624_v5 = vpack.c.bf16 %v2885_v19, %v2884_v13  ;;  %v2976_v40 = vadd.f32 %v2975_v21, %v2974_v38 }
 0xb1d   :  { %3619 = vmatpush3.bf16.msra.mxu1 %v3616_v56  ;;  %3501 = vmatprep.mubr.msk.f32.mxu1 %vm137_vm1, %v2433_v62 }
 0xb1e   :  { %3628 = vmatprep.subr.bf16.mxu1 %v3878_v14  ;;  %v2977_v25 = vrot.slane %v2976_v40, 2 }
 0xb20   :  { %v2978_v27 = vadd.f32 %v2977_v25, %v2976_v40 }
 0xb22   :  { %v2979_v31 = vrot.slane %v2978_v27, 1 }
 0xb24   :  { %3502 = vmatmul.mubr.msk.f32.vlgmr.msra.gmra.mrb[8].mxu1 %vm137_vm1, %v2435_v2  ;;  %v2980_v36 = vadd.f32 %v2979_v31, %v2978_v27 }
 0xb25   :  { %3528 = vmatprep.mubr.msk.f32.mxu1 %vm3877_vm0, %v3876_v0  ;;  %3630 = vmatpush3.bf16.msra.mxu1 %v3629_v34 }
 0xb26   :  { %v2982_v37 = vmul.f32 0.125, %v2980_v36  ;;  %3631 = vmatprep.subr.bf16.mxu1 %v3878_v14 }
 0xb29   :  { %3633 = vmatpush3.bf16.msra.mxu1 %v3632_v44 }
 0xbf7   :  { %v3503_v8 = vpop.f32.mrb[8].mxu1 }
 0xbf8   :  { %v2787_v9 = vmul.f32 0.25, %v3503_v8  ;;  %v2773_v11 = vpop.f32.mrb[9].mxu1 }
 0xbf9   :  { %v2786_v12 = vmul.f32 0.25, %v2773_v11 }
 0xbfa   :  { %v2794_v18 = vadd.f32 %v3223_v10, %v2787_v9 }
 0xbfb   :  { %v2793_v15 = vadd.f32 %v3223_v10, %v2786_v12 }
 0xbfd   :  { %3506 = vmatprep.mubr.msk.f32.mxu0 %vm54_vm2, %v2793_v15 }
 0xbfe   :  { %3507 = vmatmul.mubr.msk.f32.vlgmr.msra.gmra.mrb[18].mxu0 %vm54_vm2, %v2794_v18 }
 0xbff   :  { %3623 = vmatpush3.bf16.msra.mxu0 %v3620_v23 }
 0xc00   :  { %3625 = vmatprep.subr.bf16.mxu0 %v3624_v5 }
 0xc03   :  { %3627 = vmatpush3.bf16.msra.mxu0 %v3624_v5 }
 0xc04   :  { %3634 = vmatprep.subr.bf16.mxu0 %v3878_v14 }
 0xcd1   :  { %v3508_v22 = vpop.f32.mrb[18].mxu0 }
 0xcd2   :  { %v2873_v29 = vpop.f32.mrb[19].mxu0  ;;  %v2879_v32 = vadd.f32 %v3508_v22, %v3224_v17 }
 0xcd3   :  { %v2874_v30 = vadd.f32 %v3224_v17, %v2873_v29 }
 0xcd5   :  { %3517 = vmatprep.mubr.msk.f32.mxu0 %vm229_vm3, %v2874_v30 }
 0xcd6   :  { %3518 = vmatmul.mubr.msk.f32.vlgmr.msra.gmra.mrb[20].mxu0 %vm229_vm3, %v2879_v32 }
 0xcd7   :  { %3636 = vmatpush3.bf16.msra.mxu0 %v3635_v20  ;;  %3539 = vmatprep.mubr.msk.f32.mxu0 %vm3877_vm0, %v3876_v0  ;;  %vm3150_vm0 = vcmask 253952  }
 0xcd8   :  { %3637 = vmatprep.subr.bf16.mxu0 %v3878_v14 }
 0xcdb   :  { %3639 = vmatpush3.bf16.msra.mxu0 %v3638_v33 }
 0xcde   :  { %3540 = vmatmul.mubr.msk.f32.vlgmr.msra.gmra.mrb[22].mxu0 %vm229_vm3, %v2982_v37 }
 0xda9   :  { %v3519_v6 = vpop.f32.mrb[20].mxu0 }
 0xdaa   :  { %v2969_v0 = vadd.f32 %v3519_v6, %v3227_v45  ;;  %v2963_v50 = vpop.f32.mrb[21].mxu0 }
 0xdab   :  { %v2964_v35 = vadd.f32 %v3227_v45, %v2963_v50 }
 0xdac   :  { %v2973_v46 = vmax.f32 %v2969_v0, 0.0 }
 0xdad   :  { %v2972_v47 = vmax.f32 %v2964_v35, 0.0 }
 0xdae   :  { %v2984_v49 = vsel %vm229_vm3, %v2973_v46, 0.0 }
 0xdaf   :  { %v2983_v52 = vsel %vm229_vm3, %v2972_v47, 0.0 }
 0xdb0   :  { %v2985_v51 = vadd.f32 %v2984_v49, %v2983_v52 }
 0xdb1   :  { %v3144_v57 = vpop.f32.mrb[22].mxu0 }
 0xdb2   :  { %v2986_v39 = vrot.slane %v2985_v51, 4  ;;  %v3541_v24 = vpop.f32.mrb[23].mxu0 }
 0xdb4   :  { %v2987_v14 = vadd.f32 %v2986_v39, %v2985_v51 }
 0xdb6   :  { %v2988_v53 = vrot.slane %v2987_v14, 2 }
 0xdb8   :  { %v2989_v54 = vadd.f32 %v2988_v53, %v2987_v14 }
 0xdba   :  { %v2990_v55 = vrot.slane %v2989_v54, 1 }
 0xdbc   :  { %v2991_v59 = vadd.f32 %v2990_v55, %v2989_v54 }
 0xdbe   :  { %v2993_v56 = vmul.f32 0.0625, %v2991_v59 }
 0xdc0   :  { %3529 = vmatmul.mubr.msk.f32.vlgmr.msra.gmra.mrb[10].mxu1 %vm229_vm3, %v2993_v56 }
 0xe93   :  { %v3071_v58 = vpop.f32.mrb[10].mxu1 }
 0xe94   :  { %v3145_v61 = vadd.f32 %v3144_v57, %v3071_v58  ;;  %v3530_v62 = vpop.f32.mrb[11].mxu1 }
 0xe96   :  { %v3149_v63 = vadd.f32 %v3148_v60, %v3145_v61 }
 0xe98   :  { %3151 = vst.msk [vmem:[#allocation7] sm:$0x1] %vm3150_vm0, %v3149_v63 }
 0xe99   :  { %3855 = shalt.err (!%p3852_p6)
}
 0xe9a   :  { %s3856_s14 = scalar_lea.hbm %s4385_s5, 16 }
 0xe9b   :  { %p3857_p7 = scmp.ne.s32.totalorder %s4385_s5, %s3856_s14  ;;  %p3860_p8 = scmp.lt.u32.totalorder %s3856_s14, %s4385_s5 }
 0xe9d   :  { %p3862_p9 = pnand %p3860_p8, %p3857_p7 }
 0xe9f   :  { %3865 = shalt.err (!%p3862_p9)
}
 0xea0   :  { %3161 = dma.vmem_to_hbm [thread:$0]  %s3159_s9, 16, %s4385_s5, [#allocation4]  }
 0xea1   :  { %3870 = dma.done.wait [#allocation4], 16  }
 0xea2   :  { %3871 = vsyncadd [#allocation4], 4294967280 }
 0xea3   :  { %3165 = vsyncpa [#allocation3], 1 }
 0xea4   :  { %3166 = vsyncpa [#allocation6], 1 }
 0xea5   :  { %3167 = vsyncpa [#allocation4], 1 }

</bundles_post_ra>
